<compile_context>
chip_gen: v7x
topology: tpu7x:2x2x1
jax: 0.10.0
libtpu: 0.0.40
codegen_flags: <defaults>
</compile_context>

<pallas_src>
import functools

import jax
import jax.numpy as jnp
from jax import lax
from jax.experimental import pallas as pl
from jax.experimental.pallas import tpu as pltpu


def _round_up(x, m):
    return (x + m - 1) // m * m


# Rows of the packed per-layer vector tensor ([L, 9, E]).
_SA_B, _CA_B, _FF2_B, _LN1_G, _LN1_B, _LN2_G, _LN2_B, _LN3_G, _LN3_B = range(9)


# ----------------------------- Pallas kernel ---------------------------------

def _layernorm(v, gamma, beta, eps=1e-5):
    mu = jnp.mean(v, axis=-1, keepdims=True)
    var = jnp.mean((v - mu) ** 2, axis=-1, keepdims=True)
    return (v - mu) * lax.rsqrt(var + eps) * gamma + beta


def _decoder_kernel(num_layers, e_dim, ca_batched,
                    x_ref, m_ref,
                    sa_w_ref, ca_w_ref, ff1_w_ref, ff2_w_ref,
                    vec_ref, ff1_b_ref, out_w_ref, out_b_ref,
                    out_ref):
    L, E = num_layers, e_dim
    f32, bf16 = jnp.float32, jnp.bfloat16

    x = x_ref[...]                        # [TB, E] f32 (positional encoding already added)
    m_bf = m_ref[...].astype(bf16)        # [TB, E] cast once (memory is layer-invariant)

    # Cross-attention depends only on the memory: when E is 128-lane aligned, all layers are
    # folded into ONE bf16 matmul and per-layer slices land on vreg tile boundaries.
    if ca_batched:
        ca_all = jnp.dot(m_bf, ca_w_ref[...], preferred_element_type=f32)   # [TB, L*E]

    for l in range(L):                    # L is small -> keep unrolled (MXU-visible schedule)
        vec_l = vec_ref[l]                # [9, E] f32: one load per layer

        def row(k, _v=vec_l):             # [1, E], broadcasts over the batch tile
            return _v[k:k + 1, :]

        # Self-attention (seq len 1 => softmax over one key == 1): pre-fused single matmul.
        sa = jnp.dot(x.astype(bf16), sa_w_ref[l], preferred_element_type=f32) + row(_SA_B)
        x = _layernorm(x + sa, row(_LN1_G), row(_LN1_B))

        # Cross-attention (+ fused value/out-proj bias).
        if ca_batched:
            ca = ca_all[:, l * E:(l + 1) * E] + row(_CA_B)
        else:
            ca = jnp.dot(m_bf, ca_w_ref[l], preferred_element_type=f32) + row(_CA_B)
        x = _layernorm(x + ca, row(_LN2_G), row(_LN2_B))

        # Feed-forward: linear2(relu(linear1(x))).
        h = jnp.maximum(
            jnp.dot(x.astype(bf16), ff1_w_ref[l], preferred_element_type=f32)
            + ff1_b_ref[l], 0.0)
        ff = jnp.dot(h.astype(bf16), ff2_w_ref[l], preferred_element_type=f32) + row(_FF2_B)
        x = _layernorm(x + ff, row(_LN3_G), row(_LN3_B))

    # Output projection into a lane-dense (padded to 128) slab; wrapper slices back to ts_dim.
    out_ref[...] = (jnp.dot(x.astype(bf16), out_w_ref[...], preferred_element_type=f32)
                    + out_b_ref[...]).astype(out_ref.dtype)


# ---------------------- one-time weight preprocessing --------------------------

def positional_encoding_row(d_model):
    # Sinusoidal PE at position 0: sin(0)=0 on even dims, cos(0)=1 on odd dims.
    pe = jnp.zeros((1, d_model), dtype=jnp.float32)
    pe = pe.at[0, 1::2].set(1.0)
    return pe


def prepare_kernel_params(params, num_layers):
    """Fuse / transpose / pack / quantize weights once, outside the kernel."""
    L = num_layers
    E = params["sa_out_w"].shape[-1]
    F = params["ff1_w"].shape[1]
    ts_dim = params["out_w"].shape[0]
    out_pad = _round_up(max(ts_dim, 128), 128)
    bf16 = jnp.bfloat16

    def fuse(in_w, in_b, out_w, out_b):
        # Only the value-projection third of the packed in_proj is ever used (seq len 1).
        Wv = in_w[:, 2 * E:3 * E, :]                       # [L, E_out, E_in] (PyTorch layout)
        bv = in_b[:, :, 2 * E:3 * E]                       # [L, 1, E]
        W = jnp.einsum("lji,loj->lio", Wv, out_w)          # x @ Wv.T @ Wo.T -> [L, E_in, E_out]
        b = jnp.einsum("lkj,loj->lko", bv, out_w) + out_b  # bv @ Wo.T + bo  -> [L, 1, E]
        return W, b

    sa_w, sa_b = fuse(params["sa_in_w"], params["sa_in_b"],
                      params["sa_out_w"], params["sa_out_b"])
    ca_w, ca_b = fuse(params["ca_in_w"], params["ca_in_b"],
                      params["ca_out_w"], params["ca_out_b"])

    # Hoisted batched cross-attention only when per-layer output slices are 128-lane aligned;
    # otherwise keep per-layer [E, E] weights and do the (memory-only) dot inside the loop.
    ca_batched = (E % 128 == 0)
    if ca_batched:
        ca_w = jnp.transpose(ca_w, (1, 0, 2)).reshape(E, L * E)

    ff1_w = jnp.transpose(params["ff1_w"], (0, 2, 1))      # [L, E, F]  ([in, out])
    ff2_w = jnp.transpose(params["ff2_w"], (0, 2, 1))      # [L, F, E]

    # Pack all per-layer E-wide vectors into one operand (fewer, fatter DMAs).
    vec = jnp.concatenate([
        sa_b, ca_b, params["ff2_b"],
        params["ln1_g"], params["ln1_b"],
        params["ln2_g"], params["ln2_b"],
        params["ln3_g"], params["ln3_b"]], axis=1).astype(jnp.float32)   # [L, 9, E]

    # Lane-dense output projection (pad ts_dim -> multiple of 128).
    out_w = jnp.zeros((E, out_pad), jnp.float32).at[:, :ts_dim].set(params["out_w"].T)
    out_b = jnp.zeros((1, out_pad), jnp.float32).at[:, :ts_dim].set(params["out_b"])

    return {
        "sa_w": sa_w.astype(bf16),
        "ca_w": ca_w.astype(bf16),
        "ff1_w": ff1_w.astype(bf16),
        "ff2_w": ff2_w.astype(bf16),
        "vec": vec,
        "ff1_b": params["ff1_b"].astype(jnp.float32),
        "out_w": out_w.astype(bf16),
        "out_b": out_b,
        "ca_batched": ca_batched,
        "L": L, "E": E, "F": F, "ts_dim": ts_dim, "out_pad": out_pad,
    }


# ----------------------------- JAX wrapper ------------------------------------

def transformer_decoder_forward(ts_emb, txt_emb, kp):
    # The softmax-of-one-key attention reduction is exact ONLY for sequence length 1.
    assert ts_emb.ndim == 2 and txt_emb.ndim == 2, "kernel assumes seq_len == 1 ([B, E] inputs)"
    B, E = ts_emb.shape
    ts_dim, out_pad = kp["ts_dim"], kp["out_pad"]

    # Hoist positional-encoding add (dropout=0.0 -> identity) into the wrapper.
    pe = positional_encoding_row(E)
    x0 = ts_emb.astype(jnp.float32) + pe
    m0 = txt_emb.astype(jnp.float32) + pe

    # Batch tiling: big tiles (amortize ~0.35us/step overhead) but keep >=2 grid steps when
    # the batch allows, so both v7x TensorCores get work; TB is a multiple of 8 sublanes.
    Bp = _round_up(B, 8)
    TB = min(1024, _round_up(max((Bp + 1) // 2, 8), 8))
    Bp = _round_up(Bp, TB)
    if Bp != B:
        # Edge-pad (repeat last real row): padded rows never hit a zero-variance LayerNorm.
        x0 = jnp.pad(x0, ((0, Bp - B), (0, 0)), mode="edge")
        m0 = jnp.pad(m0, ((0, Bp - B), (0, 0)), mode="edge")

    weight_args = (kp["sa_w"], kp["ca_w"], kp["ff1_w"], kp["ff2_w"],
                   kp["vec"], kp["ff1_b"], kp["out_w"], kp["out_b"])

    # Explicit VMEM budget: resident weights + pipelined activation/output tiles + headroom,
    # capped at 56 MiB so the same setting is safe on v7x (64 MiB physical per TC).
    resident_bytes = sum(int(a.size) * a.dtype.itemsize for a in weight_args)
    tile_bytes = 2 * (2 * TB * E * 4) + 2 * (TB * out_pad * 4)
    vmem_limit = int(min(max(2 * resident_bytes + tile_bytes + (4 << 20), 32 << 20), 56 << 20))
    # TODO(synk): for production L/E/F that overflow this budget, stream per-layer weights via
    # an "arbitrary" layer grid axis (carry x as an accumulator output) instead of residency.

    kernel = functools.partial(_decoder_kernel, kp["L"], E, kp["ca_batched"])
    act_spec = pl.BlockSpec((TB, E), lambda i: (i, 0))

    def _run(single_buffer_weights):
        # Resident weights have constant index_maps -> one buffer is enough; avoids the
        # default double-buffering doubling weight VMEM (matters most on v7x).
        pipe_kw = {"pipeline_mode": pl.Buffered(1)} if single_buffer_weights else {}

        def resident(shape):
            nd = len(shape)
            return pl.BlockSpec(shape, lambda i, _nd=nd: (0,) * _nd, **pipe_kw)

        return pl.pallas_call(
            kernel,
            grid=(Bp // TB,),
            out_shape=jax.ShapeDtypeStruct((Bp, out_pad), jnp.float32),
            in_specs=[act_spec, act_spec] + [resident(a.shape) for a in weight_args],
            out_specs=pl.BlockSpec((TB, out_pad), lambda i: (i, 0)),
            compiler_params=pltpu.CompilerParams(
                dimension_semantics=("parallel",),
                vmem_limit_bytes=vmem_limit),
        )(x0, m0, *weight_args)

    try:
        out = _run(True)
    except Exception:  # pragma: no cover - fall back if Buffered(1) is unsupported
        out = _run(False)

    return out[:B, :ts_dim]


# ------------------------------ parameters -------------------------------------

def init_params(key, ts_dim, e_dim, dim_feedforward, num_layers, scale=0.05):
    ks = jax.random.split(key, 16)
    n = lambda k, shape: (scale * jax.random.normal(k, shape)).astype(jnp.float32)
    L, E, F = num_layers, e_dim, dim_feedforward
    return {
        # self-attention (nn.MultiheadAttention packed in_proj + out_proj), PyTorch [out,in]
        "sa_in_w": n(ks[0], (L, 3 * E, E)), "sa_in_b": n(ks[1], (L, 1, 3 * E)),
        "sa_out_w": n(ks[2], (L, E, E)),    "sa_out_b": n(ks[3], (L, 1, E)),
        # cross-attention
        "ca_in_w": n(ks[4], (L, 3 * E, E)), "ca_in_b": n(ks[5], (L, 1, 3 * E)),
        "ca_out_w": n(ks[6], (L, E, E)),    "ca_out_b": n(ks[7], (L, 1, E)),
        # feed-forward
        "ff1_w": n(ks[8], (L, F, E)),  "ff1_b": n(ks[9], (L, 1, F)),
        "ff2_w": n(ks[10], (L, E, F)), "ff2_b": n(ks[11], (L, 1, E)),
        # layer norms (PyTorch default init)
        "ln1_g": jnp.ones((L, 1, E), jnp.float32), "ln1_b": jnp.zeros((L, 1, E), jnp.float32),
        "ln2_g": jnp.ones((L, 1, E), jnp.float32), "ln2_b": jnp.zeros((L, 1, E), jnp.float32),
        "ln3_g": jnp.ones((L, 1, E), jnp.float32), "ln3_b": jnp.zeros((L, 1, E), jnp.float32),
        # output projection
        "out_w": n(ks[12], (ts_dim, E)), "out_b": n(ks[13], (1, ts_dim)),
    }


def round_weights_to_bf16(params):
    """Deploy-time quantization: round weight matrices to bf16-representable values so the
    f32 reference uses the same base weight values as the (bf16-stored) kernel weights."""
    q = dict(params)
    for k in ("sa_in_w", "sa_out_w", "ca_in_w", "ca_out_w", "ff1_w", "ff2_w", "out_w"):
        q[k] = params[k].astype(jnp.bfloat16).astype(jnp.float32)
    return q


# ------------------------- pure-JAX reference (full MHA) ----------------------

def ref_forward(ts_emb, txt_emb, p, nhead, num_layers):
    B, E = ts_emb.shape
    H, hd = nhead, E // nhead
    pe = positional_encoding_row(E)
    x = ts_emb + pe
    m = txt_emb + pe

    def mha(q_in, kv_in, w_in, b_in, w_out, b_out):
        q = q_in @ w_in[:E].T + b_in[0, :E]
        k = kv_in @ w_in[E:2 * E].T + b_in[0, E:2 * E]
        v = kv_in @ w_in[2 * E:].T + b_in[0, 2 * E:]
        qh = q.reshape(B, 1, H, hd)
        kh = k.reshape(B, 1, H, hd)
        vh = v.reshape(B, 1, H, hd)
        scores = jnp.einsum("bqhd,bkhd->bhqk", qh, kh) / jnp.sqrt(hd)
        attn = jax.nn.softmax(scores, axis=-1)
        o = jnp.einsum("bhqk,bkhd->bqhd", attn, vh).reshape(B, E)
        return o @ w_out.T + b_out[0]

    def ln(v, g, b):
        mu = v.mean(-1, keepdims=True)
        var = ((v - mu) ** 2).mean(-1, keepdims=True)
        return (v - mu) / jnp.sqrt(var + 1e-5) * g[0] + b[0]

    for l in range(num_layers):
        x = ln(x + mha(x, x, p["sa_in_w"][l], p["sa_in_b"][l],
                       p["sa_out_w"][l], p["sa_out_b"][l]), p["ln1_g"][l], p["ln1_b"][l])
        x = ln(x + mha(x, m, p["ca_in_w"][l], p["ca_in_b"][l],
                       p["ca_out_w"][l], p["ca_out_b"][l]), p["ln2_g"][l], p["ln2_b"][l])
        h = jnp.maximum(x @ p["ff1_w"][l].T + p["ff1_b"][l][0], 0.0)
        x = ln(x + h @ p["ff2_w"][l].T + p["ff2_b"][l][0], p["ln3_g"][l], p["ln3_b"][l])
    return x @ p["out_w"].T + p["out_b"][0]


# ----------------------------------- main --------------------------------------

if __name__ == "__main__":
    # Small config consistent with the module: ts_dim=16, output_dim(E)=32, nhead=4,
    # num_layers=2, dim_feedforward=64, dropout=0.0, project_input=False, diffusion_steps=0.
    B, TS_DIM, E, NHEAD, NUM_LAYERS, FF = 2, 16, 32, 4, 2, 64

    key = jax.random.PRNGKey(0)
    k_ts, k_txt, k_param = jax.random.split(key, 3)
    ts_emb = jax.random.normal(k_ts, (B, E), dtype=jnp.float32)    # [B, E]
    txt_emb = jax.random.normal(k_txt, (B, E), dtype=jnp.float32)  # [B, E]

    params = round_weights_to_bf16(init_params(k_param, TS_DIM, E, FF, NUM_LAYERS))
    kp = prepare_kernel_params(params, NUM_LAYERS)

    out = transformer_decoder_forward(ts_emb, txt_emb, kp)
    out = jax.block_until_ready(out)

    ref = ref_forward(ts_emb, txt_emb, params, NHEAD, NUM_LAYERS)
    assert out.shape == (B, TS_DIM)
    assert jnp.all(jnp.isfinite(out))
    # bf16 matmul operands (MXU-native) + pre-fused attention weights vs the unfused f32
    # reference: the fusion algebra is exact, residual/LN math is f32, only dot operands
    # are bf16-rounded -> sub-1e-2 agreement expected.
    err = float(jnp.max(jnp.abs(out - ref)))
    assert err < 1e-2, err

    # Second call with a larger batch: exercises edge padding + a 2-step "parallel" grid.
    B2 = 20
    kb = jax.random.split(jax.random.PRNGKey(1), 2)
    ts2 = jax.random.normal(kb[0], (B2, E), dtype=jnp.float32)
    txt2 = jax.random.normal(kb[1], (B2, E), dtype=jnp.float32)
    out2 = jax.block_until_ready(transformer_decoder_forward(ts2, txt2, kp))
    ref2 = ref_forward(ts2, txt2, params, NHEAD, NUM_LAYERS)
    assert out2.shape == (B2, TS_DIM)
    assert float(jnp.max(jnp.abs(out2 - ref2))) < 1e-2

    # TODO(synk): DiffusionRefiner tail is not instantiated (diffusion_steps=0 in this config).
    print("KERNEL_OK")
</pallas_src>

<mosaic_0001>
module attributes {stable_mosaic.version = 11 : i64} {
  func.func @_decoder_kernel(%arg0: i32, %arg1: memref<8x32xf32, #tpu.memory_space<vmem>>, %arg2: memref<8x32xf32, #tpu.memory_space<vmem>>, %arg3: memref<2x32x32xbf16, #tpu.memory_space<vmem>>, %arg4: memref<2x32x32xbf16, #tpu.memory_space<vmem>>, %arg5: memref<2x32x64xbf16, #tpu.memory_space<vmem>>, %arg6: memref<2x64x32xbf16, #tpu.memory_space<vmem>>, %arg7: memref<2x9x32xf32, #tpu.memory_space<vmem>>, %arg8: memref<2x1x64xf32, #tpu.memory_space<vmem>>, %arg9: memref<32x128xbf16, #tpu.memory_space<vmem>>, %arg10: memref<1x128xf32, #tpu.memory_space<vmem>>, %arg11: memref<8x128xf32, #tpu.memory_space<vmem>>) attributes {dimension_semantics = [#tpu.dimension_semantics<parallel>], iteration_bounds = array<i64: 1>, scalar_prefetch = 0 : i64, scratch_operands = 0 : i64, tpu.core_type = #tpu.core_type<tc>, window_params = [{transform_indices = @transform_0, window_bounds = array<i64: 8, 32>}, {transform_indices = @transform_1, window_bounds = array<i64: 8, 32>}, {pipeline_mode = #tpu.pipeline_mode<synchronous>, transform_indices = @transform_2, window_bounds = array<i64: 2, 32, 32>}, {pipeline_mode = #tpu.pipeline_mode<synchronous>, transform_indices = @transform_3, window_bounds = array<i64: 2, 32, 32>}, {pipeline_mode = #tpu.pipeline_mode<synchronous>, transform_indices = @transform_4, window_bounds = array<i64: 2, 32, 64>}, {pipeline_mode = #tpu.pipeline_mode<synchronous>, transform_indices = @transform_5, window_bounds = array<i64: 2, 64, 32>}, {pipeline_mode = #tpu.pipeline_mode<synchronous>, transform_indices = @transform_6, window_bounds = array<i64: 2, 9, 32>}, {pipeline_mode = #tpu.pipeline_mode<synchronous>, transform_indices = @transform_7, window_bounds = array<i64: 2, 1, 64>}, {pipeline_mode = #tpu.pipeline_mode<synchronous>, transform_indices = @transform_8, window_bounds = array<i64: 32, 128>}, {pipeline_mode = #tpu.pipeline_mode<synchronous>, transform_indices = @transform_9, window_bounds = array<i64: 1, 128>}, {transform_indices = @transform_10, window_bounds = array<i64: 8, 128>}]} {
    %c0 = arith.constant 0 : index
    %c0_0 = arith.constant 0 : index
    %0 = vector.load %arg1[%c0, %c0_0] : memref<8x32xf32, #tpu.memory_space<vmem>>, vector<8x32xf32>
    %c0_1 = arith.constant 0 : index
    %c0_2 = arith.constant 0 : index
    %1 = vector.load %arg2[%c0_1, %c0_2] : memref<8x32xf32, #tpu.memory_space<vmem>>, vector<8x32xf32>
    %2 = arith.truncf %1 : vector<8x32xf32> to vector<8x32xbf16>
    %c0_3 = arith.constant 0 : index
    %c0_4 = arith.constant 0 : index
    %c0_5 = arith.constant 0 : index
    %3 = vector.load %arg7[%c0_3, %c0_4, %c0_5] : memref<2x9x32xf32, #tpu.memory_space<vmem>>, vector<1x9x32xf32>
    %4 = vector.shape_cast %3 : vector<1x9x32xf32> to vector<9x32xf32>
    %5 = arith.truncf %0 : vector<8x32xf32> to vector<8x32xbf16>
    %c0_6 = arith.constant 0 : index
    %c0_7 = arith.constant 0 : index
    %c0_8 = arith.constant 0 : index
    %6 = vector.load %arg3[%c0_6, %c0_7, %c0_8] : memref<2x32x32xbf16, #tpu.memory_space<vmem>>, vector<1x32x32xbf16>
    %7 = vector.shape_cast %6 : vector<1x32x32xbf16> to vector<32x32xbf16>
    %cst = arith.constant dense<0.000000e+00> : vector<8x32xf32>
    %8 = tpu.matmul %5, %7, %cst {dimension_numbers = #tpu.dot_dimension_numbers<[1], [0], [0], [1], [0, 0, 1, 1], [], []>} : vector<8x32xbf16>, vector<32x32xbf16>, vector<8x32xf32> -> vector<8x32xf32>
    %9 = vector.extract_strided_slice %4 {offsets = [0, 0], sizes = [1, 32], strides = [1, 1]} : vector<9x32xf32> to vector<1x32xf32>
    %10 = vector.broadcast %9 : vector<1x32xf32> to vector<8x32xf32>
    %11 = arith.addf %8, %10 : vector<8x32xf32>
    %12 = arith.addf %0, %11 : vector<8x32xf32>
    %13 = vector.extract_strided_slice %4 {offsets = [3, 0], sizes = [1, 32], strides = [1, 1]} : vector<9x32xf32> to vector<1x32xf32>
    %14 = vector.extract_strided_slice %4 {offsets = [4, 0], sizes = [1, 32], strides = [1, 1]} : vector<9x32xf32> to vector<1x32xf32>
    %cst_9 = arith.constant dense<0.000000e+00> : vector<8xf32>
    %15 = vector.multi_reduction <add>, %12, %cst_9 [1] : vector<8x32xf32> to vector<8xf32>
    %16 = vector.shape_cast %15 : vector<8xf32> to vector<8x1xf32>
    %cst_10 = arith.constant 3.200000e+01 : f32
    %17 = vector.broadcast %cst_10 : f32 to vector<8x1xf32>
    %18 = arith.divf %16, %17 : vector<8x1xf32>
    %19 = vector.broadcast %18 : vector<8x1xf32> to vector<8x32xf32>
    %20 = arith.subf %12, %19 : vector<8x32xf32>
    %21 = arith.mulf %20, %20 : vector<8x32xf32>
    %cst_11 = arith.constant dense<0.000000e+00> : vector<8xf32>
    %22 = vector.multi_reduction <add>, %21, %cst_11 [1] : vector<8x32xf32> to vector<8xf32>
    %23 = vector.shape_cast %22 : vector<8xf32> to vector<8x1xf32>
    %cst_12 = arith.constant 3.200000e+01 : f32
    %24 = vector.broadcast %cst_12 : f32 to vector<8x1xf32>
    %25 = arith.divf %23, %24 : vector<8x1xf32>
    %26 = vector.broadcast %18 : vector<8x1xf32> to vector<8x32xf32>
    %27 = arith.subf %12, %26 : vector<8x32xf32>
    %cst_13 = arith.constant 9.99999974E-6 : f32
    %28 = vector.broadcast %cst_13 : f32 to vector<8x1xf32>
    %29 = arith.addf %25, %28 : vector<8x1xf32>
    %30 = math.rsqrt %29 : vector<8x1xf32>
    %31 = vector.broadcast %30 : vector<8x1xf32> to vector<8x32xf32>
    %32 = arith.mulf %27, %31 : vector<8x32xf32>
    %33 = vector.broadcast %13 : vector<1x32xf32> to vector<8x32xf32>
    %34 = arith.mulf %32, %33 : vector<8x32xf32>
    %35 = vector.broadcast %14 : vector<1x32xf32> to vector<8x32xf32>
    %36 = arith.addf %34, %35 : vector<8x32xf32>
    %c0_14 = arith.constant 0 : index
    %c0_15 = arith.constant 0 : index
    %c0_16 = arith.constant 0 : index
    %37 = vector.load %arg4[%c0_14, %c0_15, %c0_16] : memref<2x32x32xbf16, #tpu.memory_space<vmem>>, vector<1x32x32xbf16>
    %38 = vector.shape_cast %37 : vector<1x32x32xbf16> to vector<32x32xbf16>
    %cst_17 = arith.constant dense<0.000000e+00> : vector<8x32xf32>
    %39 = tpu.matmul %2, %38, %cst_17 {dimension_numbers = #tpu.dot_dimension_numbers<[1], [0], [0], [1], [0, 0, 1, 1], [], []>} : vector<8x32xbf16>, vector<32x32xbf16>, vector<8x32xf32> -> vector<8x32xf32>
    %40 = vector.extract_strided_slice %4 {offsets = [1, 0], sizes = [1, 32], strides = [1, 1]} : vector<9x32xf32> to vector<1x32xf32>
    %41 = vector.broadcast %40 : vector<1x32xf32> to vector<8x32xf32>
    %42 = arith.addf %39, %41 : vector<8x32xf32>
    %43 = arith.addf %36, %42 : vector<8x32xf32>
    %44 = vector.extract_strided_slice %4 {offsets = [5, 0], sizes = [1, 32], strides = [1, 1]} : vector<9x32xf32> to vector<1x32xf32>
    %45 = vector.extract_strided_slice %4 {offsets = [6, 0], sizes = [1, 32], strides = [1, 1]} : vector<9x32xf32> to vector<1x32xf32>
    %cst_18 = arith.constant dense<0.000000e+00> : vector<8xf32>
    %46 = vector.multi_reduction <add>, %43, %cst_18 [1] : vector<8x32xf32> to vector<8xf32>
    %47 = vector.shape_cast %46 : vector<8xf32> to vector<8x1xf32>
    %cst_19 = arith.constant 3.200000e+01 : f32
    %48 = vector.broadcast %cst_19 : f32 to vector<8x1xf32>
    %49 = arith.divf %47, %48 : vector<8x1xf32>
    %50 = vector.broadcast %49 : vector<8x1xf32> to vector<8x32xf32>
    %51 = arith.subf %43, %50 : vector<8x32xf32>
    %52 = arith.mulf %51, %51 : vector<8x32xf32>
    %cst_20 = arith.constant dense<0.000000e+00> : vector<8xf32>
    %53 = vector.multi_reduction <add>, %52, %cst_20 [1] : vector<8x32xf32> to vector<8xf32>
    %54 = vector.shape_cast %53 : vector<8xf32> to vector<8x1xf32>
    %cst_21 = arith.constant 3.200000e+01 : f32
    %55 = vector.broadcast %cst_21 : f32 to vector<8x1xf32>
    %56 = arith.divf %54, %55 : vector<8x1xf32>
    %57 = vector.broadcast %49 : vector<8x1xf32> to vector<8x32xf32>
    %58 = arith.subf %43, %57 : vector<8x32xf32>
    %cst_22 = arith.constant 9.99999974E-6 : f32
    %59 = vector.broadcast %cst_22 : f32 to vector<8x1xf32>
    %60 = arith.addf %56, %59 : vector<8x1xf32>
    %61 = math.rsqrt %60 : vector<8x1xf32>
    %62 = vector.broadcast %61 : vector<8x1xf32> to vector<8x32xf32>
    %63 = arith.mulf %58, %62 : vector<8x32xf32>
    %64 = vector.broadcast %44 : vector<1x32xf32> to vector<8x32xf32>
    %65 = arith.mulf %63, %64 : vector<8x32xf32>
    %66 = vector.broadcast %45 : vector<1x32xf32> to vector<8x32xf32>
    %67 = arith.addf %65, %66 : vector<8x32xf32>
    %68 = arith.truncf %67 : vector<8x32xf32> to vector<8x32xbf16>
    %c0_23 = arith.constant 0 : index
    %c0_24 = arith.constant 0 : index
    %c0_25 = arith.constant 0 : index
    %69 = vector.load %arg5[%c0_23, %c0_24, %c0_25] : memref<2x32x64xbf16, #tpu.memory_space<vmem>>, vector<1x32x64xbf16>
    %70 = vector.shape_cast %69 : vector<1x32x64xbf16> to vector<32x64xbf16>
    %cst_26 = arith.constant dense<0.000000e+00> : vector<8x64xf32>
    %71 = tpu.matmul %68, %70, %cst_26 {dimension_numbers = #tpu.dot_dimension_numbers<[1], [0], [0], [1], [0, 0, 1, 1], [], []>} : vector<8x32xbf16>, vector<32x64xbf16>, vector<8x64xf32> -> vector<8x64xf32>
    %c0_27 = arith.constant 0 : index
    %c0_28 = arith.constant 0 : index
    %c0_29 = arith.constant 0 : index
    %72 = vector.load %arg8[%c0_27, %c0_28, %c0_29] : memref<2x1x64xf32, #tpu.memory_space<vmem>>, vector<1x1x64xf32>
    %73 = vector.shape_cast %72 : vector<1x1x64xf32> to vector<1x64xf32>
    %74 = vector.broadcast %73 : vector<1x64xf32> to vector<8x64xf32>
    %75 = arith.addf %71, %74 : vector<8x64xf32>
    %cst_30 = arith.constant 0.000000e+00 : f32
    %76 = vector.broadcast %cst_30 : f32 to vector<8x64xf32>
    %77 = arith.maximumf %75, %76 : vector<8x64xf32>
    %78 = arith.truncf %77 : vector<8x64xf32> to vector<8x64xbf16>
    %c0_31 = arith.constant 0 : index
    %c0_32 = arith.constant 0 : index
    %c0_33 = arith.constant 0 : index
    %79 = vector.load %arg6[%c0_31, %c0_32, %c0_33] : memref<2x64x32xbf16, #tpu.memory_space<vmem>>, vector<1x64x32xbf16>
    %80 = vector.shape_cast %79 : vector<1x64x32xbf16> to vector<64x32xbf16>
    %cst_34 = arith.constant dense<0.000000e+00> : vector<8x32xf32>
    %81 = tpu.matmul %78, %80, %cst_34 {dimension_numbers = #tpu.dot_dimension_numbers<[1], [0], [0], [1], [0, 0, 1, 1], [], []>} : vector<8x64xbf16>, vector<64x32xbf16>, vector<8x32xf32> -> vector<8x32xf32>
    %82 = vector.extract_strided_slice %4 {offsets = [2, 0], sizes = [1, 32], strides = [1, 1]} : vector<9x32xf32> to vector<1x32xf32>
    %83 = vector.broadcast %82 : vector<1x32xf32> to vector<8x32xf32>
    %84 = arith.addf %81, %83 : vector<8x32xf32>
    %85 = arith.addf %67, %84 : vector<8x32xf32>
    %86 = vector.extract_strided_slice %4 {offsets = [7, 0], sizes = [1, 32], strides = [1, 1]} : vector<9x32xf32> to vector<1x32xf32>
    %87 = vector.extract_strided_slice %4 {offsets = [8, 0], sizes = [1, 32], strides = [1, 1]} : vector<9x32xf32> to vector<1x32xf32>
    %cst_35 = arith.constant dense<0.000000e+00> : vector<8xf32>
    %88 = vector.multi_reduction <add>, %85, %cst_35 [1] : vector<8x32xf32> to vector<8xf32>
    %89 = vector.shape_cast %88 : vector<8xf32> to vector<8x1xf32>
    %cst_36 = arith.constant 3.200000e+01 : f32
    %90 = vector.broadcast %cst_36 : f32 to vector<8x1xf32>
    %91 = arith.divf %89, %90 : vector<8x1xf32>
    %92 = vector.broadcast %91 : vector<8x1xf32> to vector<8x32xf32>
    %93 = arith.subf %85, %92 : vector<8x32xf32>
    %94 = arith.mulf %93, %93 : vector<8x32xf32>
    %cst_37 = arith.constant dense<0.000000e+00> : vector<8xf32>
    %95 = vector.multi_reduction <add>, %94, %cst_37 [1] : vector<8x32xf32> to vector<8xf32>
    %96 = vector.shape_cast %95 : vector<8xf32> to vector<8x1xf32>
    %cst_38 = arith.constant 3.200000e+01 : f32
    %97 = vector.broadcast %cst_38 : f32 to vector<8x1xf32>
    %98 = arith.divf %96, %97 : vector<8x1xf32>
    %99 = vector.broadcast %91 : vector<8x1xf32> to vector<8x32xf32>
    %100 = arith.subf %85, %99 : vector<8x32xf32>
    %cst_39 = arith.constant 9.99999974E-6 : f32
    %101 = vector.broadcast %cst_39 : f32 to vector<8x1xf32>
    %102 = arith.addf %98, %101 : vector<8x1xf32>
    %103 = math.rsqrt %102 : vector<8x1xf32>
    %104 = vector.broadcast %103 : vector<8x1xf32> to vector<8x32xf32>
    %105 = arith.mulf %100, %104 : vector<8x32xf32>
    %106 = vector.broadcast %86 : vector<1x32xf32> to vector<8x32xf32>
    %107 = arith.mulf %105, %106 : vector<8x32xf32>
    %108 = vector.broadcast %87 : vector<1x32xf32> to vector<8x32xf32>
    %109 = arith.addf %107, %108 : vector<8x32xf32>
    %c1 = arith.constant 1 : index
    %c0_40 = arith.constant 0 : index
    %c0_41 = arith.constant 0 : index
    %110 = vector.load %arg7[%c1, %c0_40, %c0_41] : memref<2x9x32xf32, #tpu.memory_space<vmem>>, vector<1x9x32xf32>
    %111 = vector.shape_cast %110 : vector<1x9x32xf32> to vector<9x32xf32>
    %112 = arith.truncf %109 : vector<8x32xf32> to vector<8x32xbf16>
    %c1_42 = arith.constant 1 : index
    %c0_43 = arith.constant 0 : index
    %c0_44 = arith.constant 0 : index
    %113 = vector.load %arg3[%c1_42, %c0_43, %c0_44] : memref<2x32x32xbf16, #tpu.memory_space<vmem>>, vector<1x32x32xbf16>
    %114 = vector.shape_cast %113 : vector<1x32x32xbf16> to vector<32x32xbf16>
    %cst_45 = arith.constant dense<0.000000e+00> : vector<8x32xf32>
    %115 = tpu.matmul %112, %114, %cst_45 {dimension_numbers = #tpu.dot_dimension_numbers<[1], [0], [0], [1], [0, 0, 1, 1], [], []>} : vector<8x32xbf16>, vector<32x32xbf16>, vector<8x32xf32> -> vector<8x32xf32>
    %116 = vector.extract_strided_slice %111 {offsets = [0, 0], sizes = [1, 32], strides = [1, 1]} : vector<9x32xf32> to vector<1x32xf32>
    %117 = vector.broadcast %116 : vector<1x32xf32> to vector<8x32xf32>
    %118 = arith.addf %115, %117 : vector<8x32xf32>
    %119 = arith.addf %109, %118 : vector<8x32xf32>
    %120 = vector.extract_strided_slice %111 {offsets = [3, 0], sizes = [1, 32], strides = [1, 1]} : vector<9x32xf32> to vector<1x32xf32>
    %121 = vector.extract_strided_slice %111 {offsets = [4, 0], sizes = [1, 32], strides = [1, 1]} : vector<9x32xf32> to vector<1x32xf32>
    %cst_46 = arith.constant dense<0.000000e+00> : vector<8xf32>
    %122 = vector.multi_reduction <add>, %119, %cst_46 [1] : vector<8x32xf32> to vector<8xf32>
    %123 = vector.shape_cast %122 : vector<8xf32> to vector<8x1xf32>
    %cst_47 = arith.constant 3.200000e+01 : f32
    %124 = vector.broadcast %cst_47 : f32 to vector<8x1xf32>
    %125 = arith.divf %123, %124 : vector<8x1xf32>
    %126 = vector.broadcast %125 : vector<8x1xf32> to vector<8x32xf32>
    %127 = arith.subf %119, %126 : vector<8x32xf32>
    %128 = arith.mulf %127, %127 : vector<8x32xf32>
    %cst_48 = arith.constant dense<0.000000e+00> : vector<8xf32>
    %129 = vector.multi_reduction <add>, %128, %cst_48 [1] : vector<8x32xf32> to vector<8xf32>
    %130 = vector.shape_cast %129 : vector<8xf32> to vector<8x1xf32>
    %cst_49 = arith.constant 3.200000e+01 : f32
    %131 = vector.broadcast %cst_49 : f32 to vector<8x1xf32>
    %132 = arith.divf %130, %131 : vector<8x1xf32>
    %133 = vector.broadcast %125 : vector<8x1xf32> to vector<8x32xf32>
    %134 = arith.subf %119, %133 : vector<8x32xf32>
    %cst_50 = arith.constant 9.99999974E-6 : f32
    %135 = vector.broadcast %cst_50 : f32 to vector<8x1xf32>
    %136 = arith.addf %132, %135 : vector<8x1xf32>
    %137 = math.rsqrt %136 : vector<8x1xf32>
    %138 = vector.broadcast %137 : vector<8x1xf32> to vector<8x32xf32>
    %139 = arith.mulf %134, %138 : vector<8x32xf32>
    %140 = vector.broadcast %120 : vector<1x32xf32> to vector<8x32xf32>
    %141 = arith.mulf %139, %140 : vector<8x32xf32>
    %142 = vector.broadcast %121 : vector<1x32xf32> to vector<8x32xf32>
    %143 = arith.addf %141, %142 : vector<8x32xf32>
    %c1_51 = arith.constant 1 : index
    %c0_52 = arith.constant 0 : index
    %c0_53 = arith.constant 0 : index
    %144 = vector.load %arg4[%c1_51, %c0_52, %c0_53] : memref<2x32x32xbf16, #tpu.memory_space<vmem>>, vector<1x32x32xbf16>
    %145 = vector.shape_cast %144 : vector<1x32x32xbf16> to vector<32x32xbf16>
    %cst_54 = arith.constant dense<0.000000e+00> : vector<8x32xf32>
    %146 = tpu.matmul %2, %145, %cst_54 {dimension_numbers = #tpu.dot_dimension_numbers<[1], [0], [0], [1], [0, 0, 1, 1], [], []>} : vector<8x32xbf16>, vector<32x32xbf16>, vector<8x32xf32> -> vector<8x32xf32>
    %147 = vector.extract_strided_slice %111 {offsets = [1, 0], sizes = [1, 32], strides = [1, 1]} : vector<9x32xf32> to vector<1x32xf32>
    %148 = vector.broadcast %147 : vector<1x32xf32> to vector<8x32xf32>
    %149 = arith.addf %146, %148 : vector<8x32xf32>
    %150 = arith.addf %143, %149 : vector<8x32xf32>
    %151 = vector.extract_strided_slice %111 {offsets = [5, 0], sizes = [1, 32], strides = [1, 1]} : vector<9x32xf32> to vector<1x32xf32>
    %152 = vector.extract_strided_slice %111 {offsets = [6, 0], sizes = [1, 32], strides = [1, 1]} : vector<9x32xf32> to vector<1x32xf32>
    %cst_55 = arith.constant dense<0.000000e+00> : vector<8xf32>
    %153 = vector.multi_reduction <add>, %150, %cst_55 [1] : vector<8x32xf32> to vector<8xf32>
    %154 = vector.shape_cast %153 : vector<8xf32> to vector<8x1xf32>
    %cst_56 = arith.constant 3.200000e+01 : f32
    %155 = vector.broadcast %cst_56 : f32 to vector<8x1xf32>
    %156 = arith.divf %154, %155 : vector<8x1xf32>
    %157 = vector.broadcast %156 : vector<8x1xf32> to vector<8x32xf32>
    %158 = arith.subf %150, %157 : vector<8x32xf32>
    %159 = arith.mulf %158, %158 : vector<8x32xf32>
    %cst_57 = arith.constant dense<0.000000e+00> : vector<8xf32>
    %160 = vector.multi_reduction <add>, %159, %cst_57 [1] : vector<8x32xf32> to vector<8xf32>
    %161 = vector.shape_cast %160 : vector<8xf32> to vector<8x1xf32>
    %cst_58 = arith.constant 3.200000e+01 : f32
    %162 = vector.broadcast %cst_58 : f32 to vector<8x1xf32>
    %163 = arith.divf %161, %162 : vector<8x1xf32>
    %164 = vector.broadcast %156 : vector<8x1xf32> to vector<8x32xf32>
    %165 = arith.subf %150, %164 : vector<8x32xf32>
    %cst_59 = arith.constant 9.99999974E-6 : f32
    %166 = vector.broadcast %cst_59 : f32 to vector<8x1xf32>
    %167 = arith.addf %163, %166 : vector<8x1xf32>
    %168 = math.rsqrt %167 : vector<8x1xf32>
    %169 = vector.broadcast %168 : vector<8x1xf32> to vector<8x32xf32>
    %170 = arith.mulf %165, %169 : vector<8x32xf32>
    %171 = vector.broadcast %151 : vector<1x32xf32> to vector<8x32xf32>
    %172 = arith.mulf %170, %171 : vector<8x32xf32>
    %173 = vector.broadcast %152 : vector<1x32xf32> to vector<8x32xf32>
    %174 = arith.addf %172, %173 : vector<8x32xf32>
    %175 = arith.truncf %174 : vector<8x32xf32> to vector<8x32xbf16>
    %c1_60 = arith.constant 1 : index
    %c0_61 = arith.constant 0 : index
    %c0_62 = arith.constant 0 : index
    %176 = vector.load %arg5[%c1_60, %c0_61, %c0_62] : memref<2x32x64xbf16, #tpu.memory_space<vmem>>, vector<1x32x64xbf16>
    %177 = vector.shape_cast %176 : vector<1x32x64xbf16> to vector<32x64xbf16>
    %cst_63 = arith.constant dense<0.000000e+00> : vector<8x64xf32>
    %178 = tpu.matmul %175, %177, %cst_63 {dimension_numbers = #tpu.dot_dimension_numbers<[1], [0], [0], [1], [0, 0, 1, 1], [], []>} : vector<8x32xbf16>, vector<32x64xbf16>, vector<8x64xf32> -> vector<8x64xf32>
    %c1_64 = arith.constant 1 : index
    %c0_65 = arith.constant 0 : index
    %c0_66 = arith.constant 0 : index
    %179 = vector.load %arg8[%c1_64, %c0_65, %c0_66] : memref<2x1x64xf32, #tpu.memory_space<vmem>>, vector<1x1x64xf32>
    %180 = vector.shape_cast %179 : vector<1x1x64xf32> to vector<1x64xf32>
    %181 = vector.broadcast %180 : vector<1x64xf32> to vector<8x64xf32>
    %182 = arith.addf %178, %181 : vector<8x64xf32>
    %cst_67 = arith.constant 0.000000e+00 : f32
    %183 = vector.broadcast %cst_67 : f32 to vector<8x64xf32>
    %184 = arith.maximumf %182, %183 : vector<8x64xf32>
    %185 = arith.truncf %184 : vector<8x64xf32> to vector<8x64xbf16>
    %c1_68 = arith.constant 1 : index
    %c0_69 = arith.constant 0 : index
    %c0_70 = arith.constant 0 : index
    %186 = vector.load %arg6[%c1_68, %c0_69, %c0_70] : memref<2x64x32xbf16, #tpu.memory_space<vmem>>, vector<1x64x32xbf16>
    %187 = vector.shape_cast %186 : vector<1x64x32xbf16> to vector<64x32xbf16>
    %cst_71 = arith.constant dense<0.000000e+00> : vector<8x32xf32>
    %188 = tpu.matmul %185, %187, %cst_71 {dimension_numbers = #tpu.dot_dimension_numbers<[1], [0], [0], [1], [0, 0, 1, 1], [], []>} : vector<8x64xbf16>, vector<64x32xbf16>, vector<8x32xf32> -> vector<8x32xf32>
    %189 = vector.extract_strided_slice %111 {offsets = [2, 0], sizes = [1, 32], strides = [1, 1]} : vector<9x32xf32> to vector<1x32xf32>
    %190 = vector.broadcast %189 : vector<1x32xf32> to vector<8x32xf32>
    %191 = arith.addf %188, %190 : vector<8x32xf32>
    %192 = arith.addf %174, %191 : vector<8x32xf32>
    %193 = vector.extract_strided_slice %111 {offsets = [7, 0], sizes = [1, 32], strides = [1, 1]} : vector<9x32xf32> to vector<1x32xf32>
    %194 = vector.extract_strided_slice %111 {offsets = [8, 0], sizes = [1, 32], strides = [1, 1]} : vector<9x32xf32> to vector<1x32xf32>
    %cst_72 = arith.constant dense<0.000000e+00> : vector<8xf32>
    %195 = vector.multi_reduction <add>, %192, %cst_72 [1] : vector<8x32xf32> to vector<8xf32>
    %196 = vector.shape_cast %195 : vector<8xf32> to vector<8x1xf32>
    %cst_73 = arith.constant 3.200000e+01 : f32
    %197 = vector.broadcast %cst_73 : f32 to vector<8x1xf32>
    %198 = arith.divf %196, %197 : vector<8x1xf32>
    %199 = vector.broadcast %198 : vector<8x1xf32> to vector<8x32xf32>
    %200 = arith.subf %192, %199 : vector<8x32xf32>
    %201 = arith.mulf %200, %200 : vector<8x32xf32>
    %cst_74 = arith.constant dense<0.000000e+00> : vector<8xf32>
    %202 = vector.multi_reduction <add>, %201, %cst_74 [1] : vector<8x32xf32> to vector<8xf32>
    %203 = vector.shape_cast %202 : vector<8xf32> to vector<8x1xf32>
    %cst_75 = arith.constant 3.200000e+01 : f32
    %204 = vector.broadcast %cst_75 : f32 to vector<8x1xf32>
    %205 = arith.divf %203, %204 : vector<8x1xf32>
    %206 = vector.broadcast %198 : vector<8x1xf32> to vector<8x32xf32>
    %207 = arith.subf %192, %206 : vector<8x32xf32>
    %cst_76 = arith.constant 9.99999974E-6 : f32
    %208 = vector.broadcast %cst_76 : f32 to vector<8x1xf32>
    %209 = arith.addf %205, %208 : vector<8x1xf32>
    %210 = math.rsqrt %209 : vector<8x1xf32>
    %211 = vector.broadcast %210 : vector<8x1xf32> to vector<8x32xf32>
    %212 = arith.mulf %207, %211 : vector<8x32xf32>
    %213 = vector.broadcast %193 : vector<1x32xf32> to vector<8x32xf32>
    %214 = arith.mulf %212, %213 : vector<8x32xf32>
    %215 = vector.broadcast %194 : vector<1x32xf32> to vector<8x32xf32>
    %216 = arith.addf %214, %215 : vector<8x32xf32>
    %217 = arith.truncf %216 : vector<8x32xf32> to vector<8x32xbf16>
    %c0_77 = arith.constant 0 : index
    %c0_78 = arith.constant 0 : index
    %218 = vector.load %arg9[%c0_77, %c0_78] : memref<32x128xbf16, #tpu.memory_space<vmem>>, vector<32x128xbf16>
    %cst_79 = arith.constant dense<0.000000e+00> : vector<8x128xf32>
    %219 = tpu.matmul %217, %218, %cst_79 {dimension_numbers = #tpu.dot_dimension_numbers<[1], [0], [0], [1], [0, 0, 1, 1], [], []>} : vector<8x32xbf16>, vector<32x128xbf16>, vector<8x128xf32> -> vector<8x128xf32>
    %c0_80 = arith.constant 0 : index
    %c0_81 = arith.constant 0 : index
    %220 = vector.load %arg10[%c0_80, %c0_81] : memref<1x128xf32, #tpu.memory_space<vmem>>, vector<1x128xf32>
    %221 = vector.broadcast %220 : vector<1x128xf32> to vector<8x128xf32>
    %222 = arith.addf %219, %221 : vector<8x128xf32>
    %c0_82 = arith.constant 0 : index
    %c0_83 = arith.constant 0 : index
    %223 = vector.load %arg11[%c0_82, %c0_83] : memref<8x128xf32, #tpu.memory_space<vmem>>, vector<8x128xf32>
    tpu.vector_store %arg11[%c0_82, %c0_83], %222 {strides = array<i32>} : memref<8x128xf32, #tpu.memory_space<vmem>>, vector<8x128xf32>,
    return
  }
  func.func @transform_0(%arg0: i32) -> (i32, i32) {
    %c0_i32 = arith.constant 0 : i32
    %c0_i32_0 = arith.constant 0 : i32
    return %arg0, %c0_i32 : i32, i32
  }
  func.func @transform_1(%arg0: i32) -> (i32, i32) {
    %c0_i32 = arith.constant 0 : i32
    %c0_i32_0 = arith.constant 0 : i32
    return %arg0, %c0_i32 : i32, i32
  }
  func.func @transform_2(%arg0: i32) -> (i32, i32, i32) {
    %c0_i32 = arith.constant 0 : i32
    %c0_i32_0 = arith.constant 0 : i32
    %c0_i32_1 = arith.constant 0 : i32
    %c0_i32_2 = arith.constant 0 : i32
    return %c0_i32, %c0_i32_0, %c0_i32_1 : i32, i32, i32
  }
  func.func @transform_3(%arg0: i32) -> (i32, i32, i32) {
    %c0_i32 = arith.constant 0 : i32
    %c0_i32_0 = arith.constant 0 : i32
    %c0_i32_1 = arith.constant 0 : i32
    %c0_i32_2 = arith.constant 0 : i32
    return %c0_i32, %c0_i32_0, %c0_i32_1 : i32, i32, i32
  }
  func.func @transform_4(%arg0: i32) -> (i32, i32, i32) {
    %c0_i32 = arith.constant 0 : i32
    %c0_i32_0 = arith.constant 0 : i32
    %c0_i32_1 = arith.constant 0 : i32
    %c0_i32_2 = arith.constant 0 : i32
    return %c0_i32, %c0_i32_0, %c0_i32_1 : i32, i32, i32
  }
  func.func @transform_5(%arg0: i32) -> (i32, i32, i32) {
    %c0_i32 = arith.constant 0 : i32
    %c0_i32_0 = arith.constant 0 : i32
    %c0_i32_1 = arith.constant 0 : i32
    %c0_i32_2 = arith.constant 0 : i32
    return %c0_i32, %c0_i32_0, %c0_i32_1 : i32, i32, i32
  }
  func.func @transform_6(%arg0: i32) -> (i32, i32, i32) {
    %c0_i32 = arith.constant 0 : i32
    %c0_i32_0 = arith.constant 0 : i32
    %c0_i32_1 = arith.constant 0 : i32
    %c0_i32_2 = arith.constant 0 : i32
    return %c0_i32, %c0_i32_0, %c0_i32_1 : i32, i32, i32
  }
  func.func @transform_7(%arg0: i32) -> (i32, i32, i32) {
    %c0_i32 = arith.constant 0 : i32
    %c0_i32_0 = arith.constant 0 : i32
    %c0_i32_1 = arith.constant 0 : i32
    %c0_i32_2 = arith.constant 0 : i32
    return %c0_i32, %c0_i32_0, %c0_i32_1 : i32, i32, i32
  }
  func.func @transform_8(%arg0: i32) -> (i32, i32) {
    %c0_i32 = arith.constant 0 : i32
    %c0_i32_0 = arith.constant 0 : i32
    %c0_i32_1 = arith.constant 0 : i32
    return %c0_i32, %c0_i32_0 : i32, i32
  }
  func.func @transform_9(%arg0: i32) -> (i32, i32) {
    %c0_i32 = arith.constant 0 : i32
    %c0_i32_0 = arith.constant 0 : i32
    %c0_i32_1 = arith.constant 0 : i32
    return %c0_i32, %c0_i32_0 : i32, i32
  }
  func.func @transform_10(%arg0: i32) -> (i32, i32) {
    %c0_i32 = arith.constant 0 : i32
    %c0_i32_0 = arith.constant 0 : i32
    return %arg0, %c0_i32 : i32, i32
  }
}

module attributes {stable_mosaic.version = 11 : i64} {
  func.func @_decoder_kernel(%arg0: i32, %arg1: memref<8x32xf32, #tpu.memory_space<vmem>>, %arg2: memref<8x32xf32, #tpu.memory_space<vmem>>, %arg3: memref<2x32x32xbf16, #tpu.memory_space<vmem>>, %arg4: memref<2x32x32xbf16, #tpu.memory_space<vmem>>, %arg5: memref<2x32x64xbf16, #tpu.memory_space<vmem>>, %arg6: memref<2x64x32xbf16, #tpu.memory_space<vmem>>, %arg7: memref<2x9x32xf32, #tpu.memory_space<vmem>>, %arg8: memref<2x1x64xf32, #tpu.memory_space<vmem>>, %arg9: memref<32x128xbf16, #tpu.memory_space<vmem>>, %arg10: memref<1x128xf32, #tpu.memory_space<vmem>>, %arg11: memref<8x128xf32, #tpu.memory_space<vmem>>) attributes {dimension_semantics = [#tpu.dimension_semantics<parallel>], iteration_bounds = array<i64: 1>, scalar_prefetch = 0 : i64, scratch_operands = 0 : i64, tpu.core_type = #tpu.core_type<tc>, window_params = [{transform_indices = @transform_0, window_bounds = array<i64: 8, 32>}, {transform_indices = @transform_1, window_bounds = array<i64: 8, 32>}, {pipeline_mode = #tpu.pipeline_mode<synchronous>, transform_indices = @transform_2, window_bounds = array<i64: 2, 32, 32>}, {pipeline_mode = #tpu.pipeline_mode<synchronous>, transform_indices = @transform_3, window_bounds = array<i64: 2, 32, 32>}, {pipeline_mode = #tpu.pipeline_mode<synchronous>, transform_indices = @transform_4, window_bounds = array<i64: 2, 32, 64>}, {pipeline_mode = #tpu.pipeline_mode<synchronous>, transform_indices = @transform_5, window_bounds = array<i64: 2, 64, 32>}, {pipeline_mode = #tpu.pipeline_mode<synchronous>, transform_indices = @transform_6, window_bounds = array<i64: 2, 9, 32>}, {pipeline_mode = #tpu.pipeline_mode<synchronous>, transform_indices = @transform_7, window_bounds = array<i64: 2, 1, 64>}, {pipeline_mode = #tpu.pipeline_mode<synchronous>, transform_indices = @transform_8, window_bounds = array<i64: 32, 128>}, {pipeline_mode = #tpu.pipeline_mode<synchronous>, transform_indices = @transform_9, window_bounds = array<i64: 1, 128>}, {transform_indices = @transform_10, window_bounds = array<i64: 8, 128>}]} {
    %c0 = arith.constant 0 : index
    %c0_0 = arith.constant 0 : index
    %0 = vector.load %arg1[%c0, %c0_0] : memref<8x32xf32, #tpu.memory_space<vmem>>, vector<8x32xf32>
    %c0_1 = arith.constant 0 : index
    %c0_2 = arith.constant 0 : index
    %1 = vector.load %arg2[%c0_1, %c0_2] : memref<8x32xf32, #tpu.memory_space<vmem>>, vector<8x32xf32>
    %2 = arith.truncf %1 : vector<8x32xf32> to vector<8x32xbf16>
    %c0_3 = arith.constant 0 : index
    %c0_4 = arith.constant 0 : index
    %c0_5 = arith.constant 0 : index
    %3 = vector.load %arg7[%c0_3, %c0_4, %c0_5] : memref<2x9x32xf32, #tpu.memory_space<vmem>>, vector<1x9x32xf32>
    %4 = vector.shape_cast %3 : vector<1x9x32xf32> to vector<9x32xf32>
    %5 = arith.truncf %0 : vector<8x32xf32> to vector<8x32xbf16>
    %c0_6 = arith.constant 0 : index
    %c0_7 = arith.constant 0 : index
    %c0_8 = arith.constant 0 : index
    %6 = vector.load %arg3[%c0_6, %c0_7, %c0_8] : memref<2x32x32xbf16, #tpu.memory_space<vmem>>, vector<1x32x32xbf16>
    %7 = vector.shape_cast %6 : vector<1x32x32xbf16> to vector<32x32xbf16>
    %cst = arith.constant dense<0.000000e+00> : vector<8x32xf32>
    %8 = tpu.matmul %5, %7, %cst {dimension_numbers = #tpu.dot_dimension_numbers<[1], [0], [0], [1], [0, 0, 1, 1], [], []>} : vector<8x32xbf16>, vector<32x32xbf16>, vector<8x32xf32> -> vector<8x32xf32>
    %9 = vector.extract_strided_slice %4 {offsets = [0, 0], sizes = [1, 32], strides = [1, 1]} : vector<9x32xf32> to vector<1x32xf32>
    %10 = vector.broadcast %9 : vector<1x32xf32> to vector<8x32xf32>
    %11 = arith.addf %8, %10 : vector<8x32xf32>
    %12 = arith.addf %0, %11 : vector<8x32xf32>
    %13 = vector.extract_strided_slice %4 {offsets = [3, 0], sizes = [1, 32], strides = [1, 1]} : vector<9x32xf32> to vector<1x32xf32>
    %14 = vector.extract_strided_slice %4 {offsets = [4, 0], sizes = [1, 32], strides = [1, 1]} : vector<9x32xf32> to vector<1x32xf32>
    %cst_9 = arith.constant dense<0.000000e+00> : vector<8xf32>
    %15 = vector.multi_reduction <add>, %12, %cst_9 [1] : vector<8x32xf32> to vector<8xf32>
    %16 = vector.shape_cast %15 : vector<8xf32> to vector<8x1xf32>
    %cst_10 = arith.constant 3.200000e+01 : f32
    %17 = vector.broadcast %cst_10 : f32 to vector<8x1xf32>
    %18 = arith.divf %16, %17 : vector<8x1xf32>
    %19 = vector.broadcast %18 : vector<8x1xf32> to vector<8x32xf32>
    %20 = arith.subf %12, %19 : vector<8x32xf32>
    %21 = arith.mulf %20, %20 : vector<8x32xf32>
    %cst_11 = arith.constant dense<0.000000e+00> : vector<8xf32>
    %22 = vector.multi_reduction <add>, %21, %cst_11 [1] : vector<8x32xf32> to vector<8xf32>
    %23 = vector.shape_cast %22 : vector<8xf32> to vector<8x1xf32>
    %cst_12 = arith.constant 3.200000e+01 : f32
    %24 = vector.broadcast %cst_12 : f32 to vector<8x1xf32>
    %25 = arith.divf %23, %24 : vector<8x1xf32>
    %26 = vector.broadcast %18 : vector<8x1xf32> to vector<8x32xf32>
    %27 = arith.subf %12, %26 : vector<8x32xf32>
    %cst_13 = arith.constant 9.99999974E-6 : f32
    %28 = vector.broadcast %cst_13 : f32 to vector<8x1xf32>
    %29 = arith.addf %25, %28 : vector<8x1xf32>
    %30 = math.rsqrt %29 : vector<8x1xf32>
    %31 = vector.broadcast %30 : vector<8x1xf32> to vector<8x32xf32>
    %32 = arith.mulf %27, %31 : vector<8x32xf32>
    %33 = vector.broadcast %13 : vector<1x32xf32> to vector<8x32xf32>
    %34 = arith.mulf %32, %33 : vector<8x32xf32>
    %35 = vector.broadcast %14 : vector<1x32xf32> to vector<8x32xf32>
    %36 = arith.addf %34, %35 : vector<8x32xf32>
    %c0_14 = arith.constant 0 : index
    %c0_15 = arith.constant 0 : index
    %c0_16 = arith.constant 0 : index
    %37 = vector.load %arg4[%c0_14, %c0_15, %c0_16] : memref<2x32x32xbf16, #tpu.memory_space<vmem>>, vector<1x32x32xbf16>
    %38 = vector.shape_cast %37 : vector<1x32x32xbf16> to vector<32x32xbf16>
    %cst_17 = arith.constant dense<0.000000e+00> : vector<8x32xf32>
    %39 = tpu.matmul %2, %38, %cst_17 {dimension_numbers = #tpu.dot_dimension_numbers<[1], [0], [0], [1], [0, 0, 1, 1], [], []>} : vector<8x32xbf16>, vector<32x32xbf16>, vector<8x32xf32> -> vector<8x32xf32>
    %40 = vector.extract_strided_slice %4 {offsets = [1, 0], sizes = [1, 32], strides = [1, 1]} : vector<9x32xf32> to vector<1x32xf32>
    %41 = vector.broadcast %40 : vector<1x32xf32> to vector<8x32xf32>
    %42 = arith.addf %39, %41 : vector<8x32xf32>
    %43 = arith.addf %36, %42 : vector<8x32xf32>
    %44 = vector.extract_strided_slice %4 {offsets = [5, 0], sizes = [1, 32], strides = [1, 1]} : vector<9x32xf32> to vector<1x32xf32>
    %45 = vector.extract_strided_slice %4 {offsets = [6, 0], sizes = [1, 32], strides = [1, 1]} : vector<9x32xf32> to vector<1x32xf32>
    %cst_18 = arith.constant dense<0.000000e+00> : vector<8xf32>
    %46 = vector.multi_reduction <add>, %43, %cst_18 [1] : vector<8x32xf32> to vector<8xf32>
    %47 = vector.shape_cast %46 : vector<8xf32> to vector<8x1xf32>
    %cst_19 = arith.constant 3.200000e+01 : f32
    %48 = vector.broadcast %cst_19 : f32 to vector<8x1xf32>
    %49 = arith.divf %47, %48 : vector<8x1xf32>
    %50 = vector.broadcast %49 : vector<8x1xf32> to vector<8x32xf32>
    %51 = arith.subf %43, %50 : vector<8x32xf32>
    %52 = arith.mulf %51, %51 : vector<8x32xf32>
    %cst_20 = arith.constant dense<0.000000e+00> : vector<8xf32>
    %53 = vector.multi_reduction <add>, %52, %cst_20 [1] : vector<8x32xf32> to vector<8xf32>
    %54 = vector.shape_cast %53 : vector<8xf32> to vector<8x1xf32>
    %cst_21 = arith.constant 3.200000e+01 : f32
    %55 = vector.broadcast %cst_21 : f32 to vector<8x1xf32>
    %56 = arith.divf %54, %55 : vector<8x1xf32>
    %57 = vector.broadcast %49 : vector<8x1xf32> to vector<8x32xf32>
    %58 = arith.subf %43, %57 : vector<8x32xf32>
    %cst_22 = arith.constant 9.99999974E-6 : f32
    %59 = vector.broadcast %cst_22 : f32 to vector<8x1xf32>
    %60 = arith.addf %56, %59 : vector<8x1xf32>
    %61 = math.rsqrt %60 : vector<8x1xf32>
    %62 = vector.broadcast %61 : vector<8x1xf32> to vector<8x32xf32>
    %63 = arith.mulf %58, %62 : vector<8x32xf32>
    %64 = vector.broadcast %44 : vector<1x32xf32> to vector<8x32xf32>
    %65 = arith.mulf %63, %64 : vector<8x32xf32>
    %66 = vector.broadcast %45 : vector<1x32xf32> to vector<8x32xf32>
    %67 = arith.addf %65, %66 : vector<8x32xf32>
    %68 = arith.truncf %67 : vector<8x32xf32> to vector<8x32xbf16>
    %c0_23 = arith.constant 0 : index
    %c0_24 = arith.constant 0 : index
    %c0_25 = arith.constant 0 : index
    %69 = vector.load %arg5[%c0_23, %c0_24, %c0_25] : memref<2x32x64xbf16, #tpu.memory_space<vmem>>, vector<1x32x64xbf16>
    %70 = vector.shape_cast %69 : vector<1x32x64xbf16> to vector<32x64xbf16>
    %cst_26 = arith.constant dense<0.000000e+00> : vector<8x64xf32>
    %71 = tpu.matmul %68, %70, %cst_26 {dimension_numbers = #tpu.dot_dimension_numbers<[1], [0], [0], [1], [0, 0, 1, 1], [], []>} : vector<8x32xbf16>, vector<32x64xbf16>, vector<8x64xf32> -> vector<8x64xf32>
    %c0_27 = arith.constant 0 : index
    %c0_28 = arith.constant 0 : index
    %c0_29 = arith.constant 0 : index
    %72 = vector.load %arg8[%c0_27, %c0_28, %c0_29] : memref<2x1x64xf32, #tpu.memory_space<vmem>>, vector<1x1x64xf32>
    %73 = vector.shape_cast %72 : vector<1x1x64xf32> to vector<1x64xf32>
    %74 = vector.broadcast %73 : vector<1x64xf32> to vector<8x64xf32>
    %75 = arith.addf %71, %74 : vector<8x64xf32>
    %cst_30 = arith.constant 0.000000e+00 : f32
    %76 = vector.broadcast %cst_30 : f32 to vector<8x64xf32>
    %77 = arith.maximumf %75, %76 : vector<8x64xf32>
    %78 = arith.truncf %77 : vector<8x64xf32> to vector<8x64xbf16>
    %c0_31 = arith.constant 0 : index
    %c0_32 = arith.constant 0 : index
    %c0_33 = arith.constant 0 : index
    %79 = vector.load %arg6[%c0_31, %c0_32, %c0_33] : memref<2x64x32xbf16, #tpu.memory_space<vmem>>, vector<1x64x32xbf16>
    %80 = vector.shape_cast %79 : vector<1x64x32xbf16> to vector<64x32xbf16>
    %cst_34 = arith.constant dense<0.000000e+00> : vector<8x32xf32>
    %81 = tpu.matmul %78, %80, %cst_34 {dimension_numbers = #tpu.dot_dimension_numbers<[1], [0], [0], [1], [0, 0, 1, 1], [], []>} : vector<8x64xbf16>, vector<64x32xbf16>, vector<8x32xf32> -> vector<8x32xf32>
    %82 = vector.extract_strided_slice %4 {offsets = [2, 0], sizes = [1, 32], strides = [1, 1]} : vector<9x32xf32> to vector<1x32xf32>
    %83 = vector.broadcast %82 : vector<1x32xf32> to vector<8x32xf32>
    %84 = arith.addf %81, %83 : vector<8x32xf32>
    %85 = arith.addf %67, %84 : vector<8x32xf32>
    %86 = vector.extract_strided_slice %4 {offsets = [7, 0], sizes = [1, 32], strides = [1, 1]} : vector<9x32xf32> to vector<1x32xf32>
    %87 = vector.extract_strided_slice %4 {offsets = [8, 0], sizes = [1, 32], strides = [1, 1]} : vector<9x32xf32> to vector<1x32xf32>
    %cst_35 = arith.constant dense<0.000000e+00> : vector<8xf32>
    %88 = vector.multi_reduction <add>, %85, %cst_35 [1] : vector<8x32xf32> to vector<8xf32>
    %89 = vector.shape_cast %88 : vector<8xf32> to vector<8x1xf32>
    %cst_36 = arith.constant 3.200000e+01 : f32
    %90 = vector.broadcast %cst_36 : f32 to vector<8x1xf32>
    %91 = arith.divf %89, %90 : vector<8x1xf32>
    %92 = vector.broadcast %91 : vector<8x1xf32> to vector<8x32xf32>
    %93 = arith.subf %85, %92 : vector<8x32xf32>
    %94 = arith.mulf %93, %93 : vector<8x32xf32>
    %cst_37 = arith.constant dense<0.000000e+00> : vector<8xf32>
    %95 = vector.multi_reduction <add>, %94, %cst_37 [1] : vector<8x32xf32> to vector<8xf32>
    %96 = vector.shape_cast %95 : vector<8xf32> to vector<8x1xf32>
    %cst_38 = arith.constant 3.200000e+01 : f32
    %97 = vector.broadcast %cst_38 : f32 to vector<8x1xf32>
    %98 = arith.divf %96, %97 : vector<8x1xf32>
    %99 = vector.broadcast %91 : vector<8x1xf32> to vector<8x32xf32>
    %100 = arith.subf %85, %99 : vector<8x32xf32>
    %cst_39 = arith.constant 9.99999974E-6 : f32
    %101 = vector.broadcast %cst_39 : f32 to vector<8x1xf32>
    %102 = arith.addf %98, %101 : vector<8x1xf32>
    %103 = math.rsqrt %102 : vector<8x1xf32>
    %104 = vector.broadcast %103 : vector<8x1xf32> to vector<8x32xf32>
    %105 = arith.mulf %100, %104 : vector<8x32xf32>
    %106 = vector.broadcast %86 : vector<1x32xf32> to vector<8x32xf32>
    %107 = arith.mulf %105, %106 : vector<8x32xf32>
    %108 = vector.broadcast %87 : vector<1x32xf32> to vector<8x32xf32>
    %109 = arith.addf %107, %108 : vector<8x32xf32>
    %c1 = arith.constant 1 : index
    %c0_40 = arith.constant 0 : index
    %c0_41 = arith.constant 0 : index
    %110 = vector.load %arg7[%c1, %c0_40, %c0_41] : memref<2x9x32xf32, #tpu.memory_space<vmem>>, vector<1x9x32xf32>
    %111 = vector.shape_cast %110 : vector<1x9x32xf32> to vector<9x32xf32>
    %112 = arith.truncf %109 : vector<8x32xf32> to vector<8x32xbf16>
    %c1_42 = arith.constant 1 : index
    %c0_43 = arith.constant 0 : index
    %c0_44 = arith.constant 0 : index
    %113 = vector.load %arg3[%c1_42, %c0_43, %c0_44] : memref<2x32x32xbf16, #tpu.memory_space<vmem>>, vector<1x32x32xbf16>
    %114 = vector.shape_cast %113 : vector<1x32x32xbf16> to vector<32x32xbf16>
    %cst_45 = arith.constant dense<0.000000e+00> : vector<8x32xf32>
    %115 = tpu.matmul %112, %114, %cst_45 {dimension_numbers = #tpu.dot_dimension_numbers<[1], [0], [0], [1], [0, 0, 1, 1], [], []>} : vector<8x32xbf16>, vector<32x32xbf16>, vector<8x32xf32> -> vector<8x32xf32>
    %116 = vector.extract_strided_slice %111 {offsets = [0, 0], sizes = [1, 32], strides = [1, 1]} : vector<9x32xf32> to vector<1x32xf32>
    %117 = vector.broadcast %116 : vector<1x32xf32> to vector<8x32xf32>
    %118 = arith.addf %115, %117 : vector<8x32xf32>
    %119 = arith.addf %109, %118 : vector<8x32xf32>
    %120 = vector.extract_strided_slice %111 {offsets = [3, 0], sizes = [1, 32], strides = [1, 1]} : vector<9x32xf32> to vector<1x32xf32>
    %121 = vector.extract_strided_slice %111 {offsets = [4, 0], sizes = [1, 32], strides = [1, 1]} : vector<9x32xf32> to vector<1x32xf32>
    %cst_46 = arith.constant dense<0.000000e+00> : vector<8xf32>
    %122 = vector.multi_reduction <add>, %119, %cst_46 [1] : vector<8x32xf32> to vector<8xf32>
    %123 = vector.shape_cast %122 : vector<8xf32> to vector<8x1xf32>
    %cst_47 = arith.constant 3.200000e+01 : f32
    %124 = vector.broadcast %cst_47 : f32 to vector<8x1xf32>
    %125 = arith.divf %123, %124 : vector<8x1xf32>
    %126 = vector.broadcast %125 : vector<8x1xf32> to vector<8x32xf32>
    %127 = arith.subf %119, %126 : vector<8x32xf32>
    %128 = arith.mulf %127, %127 : vector<8x32xf32>
    %cst_48 = arith.constant dense<0.000000e+00> : vector<8xf32>
    %129 = vector.multi_reduction <add>, %128, %cst_48 [1] : vector<8x32xf32> to vector<8xf32>
    %130 = vector.shape_cast %129 : vector<8xf32> to vector<8x1xf32>
    %cst_49 = arith.constant 3.200000e+01 : f32
    %131 = vector.broadcast %cst_49 : f32 to vector<8x1xf32>
    %132 = arith.divf %130, %131 : vector<8x1xf32>
    %133 = vector.broadcast %125 : vector<8x1xf32> to vector<8x32xf32>
    %134 = arith.subf %119, %133 : vector<8x32xf32>
    %cst_50 = arith.constant 9.99999974E-6 : f32
    %135 = vector.broadcast %cst_50 : f32 to vector<8x1xf32>
    %136 = arith.addf %132, %135 : vector<8x1xf32>
    %137 = math.rsqrt %136 : vector<8x1xf32>
    %138 = vector.broadcast %137 : vector<8x1xf32> to vector<8x32xf32>
    %139 = arith.mulf %134, %138 : vector<8x32xf32>
    %140 = vector.broadcast %120 : vector<1x32xf32> to vector<8x32xf32>
    %141 = arith.mulf %139, %140 : vector<8x32xf32>
    %142 = vector.broadcast %121 : vector<1x32xf32> to vector<8x32xf32>
    %143 = arith.addf %141, %142 : vector<8x32xf32>
    %c1_51 = arith.constant 1 : index
    %c0_52 = arith.constant 0 : index
    %c0_53 = arith.constant 0 : index
    %144 = vector.load %arg4[%c1_51, %c0_52, %c0_53] : memref<2x32x32xbf16, #tpu.memory_space<vmem>>, vector<1x32x32xbf16>
    %145 = vector.shape_cast %144 : vector<1x32x32xbf16> to vector<32x32xbf16>
    %cst_54 = arith.constant dense<0.000000e+00> : vector<8x32xf32>
    %146 = tpu.matmul %2, %145, %cst_54 {dimension_numbers = #tpu.dot_dimension_numbers<[1], [0], [0], [1], [0, 0, 1, 1], [], []>} : vector<8x32xbf16>, vector<32x32xbf16>, vector<8x32xf32> -> vector<8x32xf32>
    %147 = vector.extract_strided_slice %111 {offsets = [1, 0], sizes = [1, 32], strides = [1, 1]} : vector<9x32xf32> to vector<1x32xf32>
    %148 = vector.broadcast %147 : vector<1x32xf32> to vector<8x32xf32>
    %149 = arith.addf %146, %148 : vector<8x32xf32>
    %150 = arith.addf %143, %149 : vector<8x32xf32>
    %151 = vector.extract_strided_slice %111 {offsets = [5, 0], sizes = [1, 32], strides = [1, 1]} : vector<9x32xf32> to vector<1x32xf32>
    %152 = vector.extract_strided_slice %111 {offsets = [6, 0], sizes = [1, 32], strides = [1, 1]} : vector<9x32xf32> to vector<1x32xf32>
    %cst_55 = arith.constant dense<0.000000e+00> : vector<8xf32>
    %153 = vector.multi_reduction <add>, %150, %cst_55 [1] : vector<8x32xf32> to vector<8xf32>
    %154 = vector.shape_cast %153 : vector<8xf32> to vector<8x1xf32>
    %cst_56 = arith.constant 3.200000e+01 : f32
    %155 = vector.broadcast %cst_56 : f32 to vector<8x1xf32>
    %156 = arith.divf %154, %155 : vector<8x1xf32>
    %157 = vector.broadcast %156 : vector<8x1xf32> to vector<8x32xf32>
    %158 = arith.subf %150, %157 : vector<8x32xf32>
    %159 = arith.mulf %158, %158 : vector<8x32xf32>
    %cst_57 = arith.constant dense<0.000000e+00> : vector<8xf32>
    %160 = vector.multi_reduction <add>, %159, %cst_57 [1] : vector<8x32xf32> to vector<8xf32>
    %161 = vector.shape_cast %160 : vector<8xf32> to vector<8x1xf32>
    %cst_58 = arith.constant 3.200000e+01 : f32
    %162 = vector.broadcast %cst_58 : f32 to vector<8x1xf32>
    %163 = arith.divf %161, %162 : vector<8x1xf32>
    %164 = vector.broadcast %156 : vector<8x1xf32> to vector<8x32xf32>
    %165 = arith.subf %150, %164 : vector<8x32xf32>
    %cst_59 = arith.constant 9.99999974E-6 : f32
    %166 = vector.broadcast %cst_59 : f32 to vector<8x1xf32>
    %167 = arith.addf %163, %166 : vector<8x1xf32>
    %168 = math.rsqrt %167 : vector<8x1xf32>
    %169 = vector.broadcast %168 : vector<8x1xf32> to vector<8x32xf32>
    %170 = arith.mulf %165, %169 : vector<8x32xf32>
    %171 = vector.broadcast %151 : vector<1x32xf32> to vector<8x32xf32>
    %172 = arith.mulf %170, %171 : vector<8x32xf32>
    %173 = vector.broadcast %152 : vector<1x32xf32> to vector<8x32xf32>
    %174 = arith.addf %172, %173 : vector<8x32xf32>
    %175 = arith.truncf %174 : vector<8x32xf32> to vector<8x32xbf16>
    %c1_60 = arith.constant 1 : index
    %c0_61 = arith.constant 0 : index
    %c0_62 = arith.constant 0 : index
    %176 = vector.load %arg5[%c1_60, %c0_61, %c0_62] : memref<2x32x64xbf16, #tpu.memory_space<vmem>>, vector<1x32x64xbf16>
    %177 = vector.shape_cast %176 : vector<1x32x64xbf16> to vector<32x64xbf16>
    %cst_63 = arith.constant dense<0.000000e+00> : vector<8x64xf32>
    %178 = tpu.matmul %175, %177, %cst_63 {dimension_numbers = #tpu.dot_dimension_numbers<[1], [0], [0], [1], [0, 0, 1, 1], [], []>} : vector<8x32xbf16>, vector<32x64xbf16>, vector<8x64xf32> -> vector<8x64xf32>
    %c1_64 = arith.constant 1 : index
    %c0_65 = arith.constant 0 : index
    %c0_66 = arith.constant 0 : index
    %179 = vector.load %arg8[%c1_64, %c0_65, %c0_66] : memref<2x1x64xf32, #tpu.memory_space<vmem>>, vector<1x1x64xf32>
    %180 = vector.shape_cast %179 : vector<1x1x64xf32> to vector<1x64xf32>
    %181 = vector.broadcast %180 : vector<1x64xf32> to vector<8x64xf32>
    %182 = arith.addf %178, %181 : vector<8x64xf32>
    %cst_67 = arith.constant 0.000000e+00 : f32
    %183 = vector.broadcast %cst_67 : f32 to vector<8x64xf32>
    %184 = arith.maximumf %182, %183 : vector<8x64xf32>
    %185 = arith.truncf %184 : vector<8x64xf32> to vector<8x64xbf16>
    %c1_68 = arith.constant 1 : index
    %c0_69 = arith.constant 0 : index
    %c0_70 = arith.constant 0 : index
    %186 = vector.load %arg6[%c1_68, %c0_69, %c0_70] : memref<2x64x32xbf16, #tpu.memory_space<vmem>>, vector<1x64x32xbf16>
    %187 = vector.shape_cast %186 : vector<1x64x32xbf16> to vector<64x32xbf16>
    %cst_71 = arith.constant dense<0.000000e+00> : vector<8x32xf32>
    %188 = tpu.matmul %185, %187, %cst_71 {dimension_numbers = #tpu.dot_dimension_numbers<[1], [0], [0], [1], [0, 0, 1, 1], [], []>} : vector<8x64xbf16>, vector<64x32xbf16>, vector<8x32xf32> -> vector<8x32xf32>
    %189 = vector.extract_strided_slice %111 {offsets = [2, 0], sizes = [1, 32], strides = [1, 1]} : vector<9x32xf32> to vector<1x32xf32>
    %190 = vector.broadcast %189 : vector<1x32xf32> to vector<8x32xf32>
    %191 = arith.addf %188, %190 : vector<8x32xf32>
    %192 = arith.addf %174, %191 : vector<8x32xf32>
    %193 = vector.extract_strided_slice %111 {offsets = [7, 0], sizes = [1, 32], strides = [1, 1]} : vector<9x32xf32> to vector<1x32xf32>
    %194 = vector.extract_strided_slice %111 {offsets = [8, 0], sizes = [1, 32], strides = [1, 1]} : vector<9x32xf32> to vector<1x32xf32>
    %cst_72 = arith.constant dense<0.000000e+00> : vector<8xf32>
    %195 = vector.multi_reduction <add>, %192, %cst_72 [1] : vector<8x32xf32> to vector<8xf32>
    %196 = vector.shape_cast %195 : vector<8xf32> to vector<8x1xf32>
    %cst_73 = arith.constant 3.200000e+01 : f32
    %197 = vector.broadcast %cst_73 : f32 to vector<8x1xf32>
    %198 = arith.divf %196, %197 : vector<8x1xf32>
    %199 = vector.broadcast %198 : vector<8x1xf32> to vector<8x32xf32>
    %200 = arith.subf %192, %199 : vector<8x32xf32>
    %201 = arith.mulf %200, %200 : vector<8x32xf32>
    %cst_74 = arith.constant dense<0.000000e+00> : vector<8xf32>
    %202 = vector.multi_reduction <add>, %201, %cst_74 [1] : vector<8x32xf32> to vector<8xf32>
    %203 = vector.shape_cast %202 : vector<8xf32> to vector<8x1xf32>
    %cst_75 = arith.constant 3.200000e+01 : f32
    %204 = vector.broadcast %cst_75 : f32 to vector<8x1xf32>
    %205 = arith.divf %203, %204 : vector<8x1xf32>
    %206 = vector.broadcast %198 : vector<8x1xf32> to vector<8x32xf32>
    %207 = arith.subf %192, %206 : vector<8x32xf32>
    %cst_76 = arith.constant 9.99999974E-6 : f32
    %208 = vector.broadcast %cst_76 : f32 to vector<8x1xf32>
    %209 = arith.addf %205, %208 : vector<8x1xf32>
    %210 = math.rsqrt %209 : vector<8x1xf32>
    %211 = vector.broadcast %210 : vector<8x1xf32> to vector<8x32xf32>
    %212 = arith.mulf %207, %211 : vector<8x32xf32>
    %213 = vector.broadcast %193 : vector<1x32xf32> to vector<8x32xf32>
    %214 = arith.mulf %212, %213 : vector<8x32xf32>
    %215 = vector.broadcast %194 : vector<1x32xf32> to vector<8x32xf32>
    %216 = arith.addf %214, %215 : vector<8x32xf32>
    %217 = arith.truncf %216 : vector<8x32xf32> to vector<8x32xbf16>
    %c0_77 = arith.constant 0 : index
    %c0_78 = arith.constant 0 : index
    %218 = vector.load %arg9[%c0_77, %c0_78] : memref<32x128xbf16, #tpu.memory_space<vmem>>, vector<32x128xbf16>
    %cst_79 = arith.constant dense<0.000000e+00> : vector<8x128xf32>
    %219 = tpu.matmul %217, %218, %cst_79 {dimension_numbers = #tpu.dot_dimension_numbers<[1], [0], [0], [1], [0, 0, 1, 1], [], []>} : vector<8x32xbf16>, vector<32x128xbf16>, vector<8x128xf32> -> vector<8x128xf32>
    %c0_80 = arith.constant 0 : index
    %c0_81 = arith.constant 0 : index
    %220 = vector.load %arg10[%c0_80, %c0_81] : memref<1x128xf32, #tpu.memory_space<vmem>>, vector<1x128xf32>
    %221 = vector.broadcast %220 : vector<1x128xf32> to vector<8x128xf32>
    %222 = arith.addf %219, %221 : vector<8x128xf32>
    %c0_82 = arith.constant 0 : index
    %c0_83 = arith.constant 0 : index
    %223 = vector.load %arg11[%c0_82, %c0_83] : memref<8x128xf32, #tpu.memory_space<vmem>>, vector<8x128xf32>
    tpu.vector_store %arg11[%c0_82, %c0_83], %222 {strides = array<i32>} : memref<8x128xf32, #tpu.memory_space<vmem>>, vector<8x128xf32>,
    return
  }
  func.func @transform_0(%arg0: i32) -> (i32, i32) {
    %c0_i32 = arith.constant 0 : i32
    %c0_i32_0 = arith.constant 0 : i32
    return %arg0, %c0_i32 : i32, i32
  }
  func.func @transform_1(%arg0: i32) -> (i32, i32) {
    %c0_i32 = arith.constant 0 : i32
    %c0_i32_0 = arith.constant 0 : i32
    return %arg0, %c0_i32 : i32, i32
  }
  func.func @transform_2(%arg0: i32) -> (i32, i32, i32) {
    %c0_i32 = arith.constant 0 : i32
    %c0_i32_0 = arith.constant 0 : i32
    %c0_i32_1 = arith.constant 0 : i32
    %c0_i32_2 = arith.constant 0 : i32
    return %c0_i32, %c0_i32_0, %c0_i32_1 : i32, i32, i32
  }
  func.func @transform_3(%arg0: i32) -> (i32, i32, i32) {
    %c0_i32 = arith.constant 0 : i32
    %c0_i32_0 = arith.constant 0 : i32
    %c0_i32_1 = arith.constant 0 : i32
    %c0_i32_2 = arith.constant 0 : i32
    return %c0_i32, %c0_i32_0, %c0_i32_1 : i32, i32, i32
  }
  func.func @transform_4(%arg0: i32) -> (i32, i32, i32) {
    %c0_i32 = arith.constant 0 : i32
    %c0_i32_0 = arith.constant 0 : i32
    %c0_i32_1 = arith.constant 0 : i32
    %c0_i32_2 = arith.constant 0 : i32
    return %c0_i32, %c0_i32_0, %c0_i32_1 : i32, i32, i32
  }
  func.func @transform_5(%arg0: i32) -> (i32, i32, i32) {
    %c0_i32 = arith.constant 0 : i32
    %c0_i32_0 = arith.constant 0 : i32
    %c0_i32_1 = arith.constant 0 : i32
    %c0_i32_2 = arith.constant 0 : i32
    return %c0_i32, %c0_i32_0, %c0_i32_1 : i32, i32, i32
  }
  func.func @transform_6(%arg0: i32) -> (i32, i32, i32) {
    %c0_i32 = arith.constant 0 : i32
    %c0_i32_0 = arith.constant 0 : i32
    %c0_i32_1 = arith.constant 0 : i32
    %c0_i32_2 = arith.constant 0 : i32
    return %c0_i32, %c0_i32_0, %c0_i32_1 : i32, i32, i32
  }
  func.func @transform_7(%arg0: i32) -> (i32, i32, i32) {
    %c0_i32 = arith.constant 0 : i32
    %c0_i32_0 = arith.constant 0 : i32
    %c0_i32_1 = arith.constant 0 : i32
    %c0_i32_2 = arith.constant 0 : i32
    return %c0_i32, %c0_i32_0, %c0_i32_1 : i32, i32, i32
  }
  func.func @transform_8(%arg0: i32) -> (i32, i32) {
    %c0_i32 = arith.constant 0 : i32
    %c0_i32_0 = arith.constant 0 : i32
    %c0_i32_1 = arith.constant 0 : i32
    return %c0_i32, %c0_i32_0 : i32, i32
  }
  func.func @transform_9(%arg0: i32) -> (i32, i32) {
    %c0_i32 = arith.constant 0 : i32
    %c0_i32_0 = arith.constant 0 : i32
    %c0_i32_1 = arith.constant 0 : i32
    return %c0_i32, %c0_i32_0 : i32, i32
  }
  func.func @transform_10(%arg0: i32) -> (i32, i32) {
    %c0_i32 = arith.constant 0 : i32
    %c0_i32_0 = arith.constant 0 : i32
    return %arg0, %c0_i32 : i32, i32
  }
}

</mosaic_0001>

<bundles_post_ra>
// kernel: tpu_custom_call.1
= control target key start
LH: loop header
LB: loop body
LE: loop exit
PB: predicated region body
PF: predicated region fallthrough
CT: control target
= control target key end

     0   :  { %15 = vsyncpa [#allocation3], 0  ;;  %s1443_s0 = inlined_call_operand.hbm [shape: f32[8,32], index: 0, kind: input, shape index: {}]   ;;  %s1444_s1 = inlined_call_operand.hbm [shape: f32[8,32], index: 1, kind: input, shape index: {}]   ;;  %s1445_s2 = inlined_call_operand.vmem [shape: bf16[2,32,32], index: 2, kind: input, shape index: {}]   ;;  %s1446_s3 = inlined_call_operand.vmem [shape: bf16[2,32,32], index: 3, kind: input, shape index: {}]   ;;  %s1447_s4 = inlined_call_operand.vmem [shape: bf16[2,32,64], index: 4, kind: input, shape index: {}]   ;;  %s1448_s5 = inlined_call_operand.vmem [shape: bf16[2,64,32], index: 5, kind: input, shape index: {}]   ;;  %s1449_s6 = inlined_call_operand.vmem [shape: f32[2,9,32], index: 6, kind: input, shape index: {}]   ;;  %s1450_s7 = inlined_call_operand.vmem [shape: f32[2,1,64], index: 7, kind: input, shape index: {}]   ;;  %s1451_s8 = inlined_call_operand.vmem [shape: bf16[32,128], index: 8, kind: input, shape index: {}]   ;;  %s1452_s9 = inlined_call_operand.vmem [shape: f32[1,128], index: 9, kind: input, shape index: {}]   ;;  %s1453_s10 = inlined_call_operand.hbm [shape: f32[8,128], index: 10, kind: output, shape index: {}]  }
   0x1   :  { %16 = vsyncpa [#allocation6], 0 }
   0x2   :  { %17 = vsyncpa [#allocation4], 0  ;;  %s1133_s13 = smov [#allocation2]   ;;  %s1134_s15 = smov [#allocation5]  }
   0x3   :  { %s24_s14 = sshll.u32 %s1133_s13, 4  ;;  %s34_s16 = sshll.u32 %s1134_s15, 4  ;;  %s25_s14 = int_to_ptr.vmem [resolvable:$true] %s24_s14  ;;  %s35_s16 = int_to_ptr.vmem [resolvable:$true] %s34_s16 }
   0x4   :  { %s1061_s19 = scalar_lea.hbm %s1443_s0, 128 }
   0x5   :  { %p1062_p0 = scmp.ne.s32.totalorder %s1443_s0, %s1061_s19  ;;  %p1065_p1 = scmp.lt.u32.totalorder %s1061_s19, %s1443_s0 }
   0x7   :  { %p1067_p2 = pnand %p1065_p1, %p1062_p0 }
   0x9   :  { %1070 = shalt.err (!%p1067_p2)
}
   0xa   :  { %s1071_s24 = scalar_lea.vmem %s25_s14, 128  ;;  %p1076_p4 = scmp.lt.s32.totalorder %s25_s14, %s25_s14 }
   0xb   :  { %p1072_p3 = scmp.ne.s32.totalorder %s25_s14, %s1071_s24  ;;  %p1077_p5 = scmp.lt.s32.totalorder %s1071_s24, %s1071_s24 }
   0xd   :  { %p1078_p6 = por %p1077_p5, %p1076_p4 }
   0xf   :  { %p1079_p7 = pnand %p1078_p6, %p1072_p3 }
  0x11   :  { %1082 = shalt.err (!%p1079_p7)
}
  0x12   :  { %27 = dma.hbm_to_vmem [thread:$0]  %s1443_s0, 128, %s25_s14, [#allocation3]  }
  0x13   :  { %s1083_s29 = scalar_lea.hbm %s1444_s1, 128 }
  0x14   :  { %p1084_p8 = scmp.ne.s32.totalorder %s1444_s1, %s1083_s29  ;;  %p1087_p9 = scmp.lt.u32.totalorder %s1083_s29, %s1444_s1 }
  0x16   :  { %p1089_p10 = pnand %p1087_p9, %p1084_p8 }
  0x18   :  { %1092 = shalt.err (!%p1089_p10)
}
  0x19   :  { %s1093_s15 = scalar_lea.vmem %s35_s16, 128  ;;  %p1098_p12 = scmp.lt.s32.totalorder %s35_s16, %s35_s16 }
  0x1a   :  { %p1094_p11 = scmp.ne.s32.totalorder %s35_s16, %s1093_s15  ;;  %p1099_p13 = scmp.lt.s32.totalorder %s1093_s15, %s1093_s15 }
  0x1c   :  { %p1100_p0 = por %p1099_p13, %p1098_p12 }
  0x1e   :  { %p1101_p1 = pnand %p1100_p0, %p1094_p11 }
  0x20   :  { %1104 = shalt.err (!%p1101_p1)
}
  0x21   :  { %37 = dma.hbm_to_vmem [thread:$0]  %s1444_s1, 128, %s35_s16, [#allocation6]  }
  0x22   :  { %1127 = dma.done.wait [#allocation3], 128  }
  0x23   :  { %1128 = vsyncadd [#allocation3], 4294967168 }
  0x24   :  { %1129 = dma.done.wait [#allocation6], 128  }
  0x25   :  { %1130 = vsyncadd [#allocation6], 4294967168  ;;  %v1135_v0 = vmov 0.0   ;;  %vm1136_vm0 = vmmov 0   ;;  %v1027_v1 = vld [vmem:[%s1445_s2] sm:$0xff]   ;;  %v1028_v2 = vld [vmem:[%s1445_s2 + $0x8] sm:$0xff]   ;;  %v71_v9 = vlaneseq }
  0x26   :  { %942 = vmatprep.subr.bf16.mxu0 %v1135_v0  ;;  %946 = vmatprep.mubr.msk.bf16.mxu0 %vm1136_vm0, %v1135_v0  ;;  %v61_v3 = vld [vmem:[#allocation2] sm:$0xff]  ;;  %vm87_vm1 = vcmask 261120   ;;  %v1030_v6 = vld [vmem:[%s1446_s3 + $0x8] sm:$0xff]   ;;  %vm348_vm2 = vcmask 523264  }
  0x27   :  { %950 = vmatprep.subr.bf16.mxu1 %v1135_v0  ;;  %954 = vmatprep.mubr.msk.bf16.mxu1 %vm1136_vm0, %v1135_v0  ;;  %v66_v4 = vpack.c.bf16 %v61_v3, %v61_v3  ;;  %v1029_v5 = vld [vmem:[%s1446_s3] sm:$0xff]   ;;  %v62_v7 = vld [vmem:[#allocation5] sm:$0xff]  ;;  %v1248_v10 = vshrl.u32 %v71_v9, 7 }
  0x28   :  { %943 = vmatpush3.bf16.msra.mxu0 %v1027_v1  ;;  %951 = vmatpush3.bf16.msra.mxu1 %v1029_v5  ;;  %v1241_v8 = vpack.c.bf16 %v62_v7, %v62_v7  ;;  %v1254_v12 = vld [vmem:[%s1449_s6] sm:$0xff]  ;;  %v1032_v52 = vld [vmem:[%s1447_s4 + $0x8] sm:$0xff]   ;;  %v1036_v5 = vld [vmem:[%s1448_s5 + $0x18] sm:$0xff]  }
  0x29   :  { %944 = vmatprep.subr.bf16.mxu0 %v1135_v0  ;;  %952 = vmatprep.subr.bf16.mxu1 %v1135_v0  ;;  %v73_v11 = vsub.s32 0, %v1248_v10  ;;  %v162_v33 = vsub.s32 1, %v1248_v10  ;;  %v148_v34 = vsub.s32 3, %v1248_v10  ;;  %v153_v35 = vsub.s32 4, %v1248_v10  ;;  %v1031_v51 = vld [vmem:[%s1447_s4] sm:$0xff]   ;;  %v1034_v54 = vld [vmem:[%s1448_s5 + $0x8] sm:$0xff]  }
  0x2a   :  { %v1033_v53 = vld [vmem:[%s1448_s5] sm:$0xff]   ;;  %v235_v58 = vsub.s32 5, %v1248_v10  ;;  %v240_v59 = vsub.s32 6, %v1248_v10 }
  0x2b   :  { %v74_v13 = vrot.slane %v1254_v12, %v73_v11  ;;  %v163_v36 = vrot.slane %v1254_v12, %v162_v33  ;;  %v149_v37 = vrot.slane %v1254_v12, %v148_v34  ;;  %v154_v40 = vrot.slane %v1254_v12, %v153_v35 }
  0x2c   :  { %945 = vmatpush3.bf16.msra.mxu0 %v1028_v2  ;;  %953 = vmatpush3.bf16.msra.mxu1 %v1030_v6  ;;  %v236_v60 = vrot.slane %v1254_v12, %v235_v58  ;;  %v241_v63 = vrot.slane %v1254_v12, %v240_v59  ;;  %v858_v6 = vld [vmem:[%s1450_s7] ss:$0 sm:$0xff] }
  0x2d   :  { %958 = vmatprep.subr.bf16.mxu0 %v1135_v0  ;;  %966 = vmatprep.subr.bf16.mxu1 %v1135_v0 }
  0x2f   :  { %947 = vmatmul.mubr.msk.bf16.vlgmr.msra.gmra.mrb[0].mxu0 %vm87_vm1, %v66_v4  ;;  %955 = vmatmul.mubr.msk.bf16.vlgmr.msra.gmra.mrb[0].mxu1 %vm87_vm1, %v1241_v8  ;;  %v1035_v4 = vld [vmem:[%s1448_s5 + $0x10] sm:$0xff]  }
  0x30   :  { %962 = vmatprep.mubr.msk.bf16.mxu0 %vm1136_vm0, %v1135_v0  ;;  %974 = vmatprep.mubr.msk.bf16.mxu1 %vm1136_vm0, %v1135_v0 }
  0x31   :  { %959 = vmatpush3.bf16.msra.mxu0 %v1031_v51  ;;  %967 = vmatpush3.bf16.msra.mxu1 %v1033_v53 }
  0x32   :  { %960 = vmatprep.subr.bf16.mxu0 %v1135_v0  ;;  %968 = vmatprep.subr.bf16.mxu1 %v1135_v0 }
  0x35   :  { %961 = vmatpush3.bf16.msra.mxu0 %v1032_v52  ;;  %969 = vmatpush3.bf16.msra.mxu1 %v1034_v54 }
  0x36   :  { %978 = vmatprep.subr.bf16.mxu0 %v1135_v0  ;;  %970 = vmatprep.subr.bf16.mxu1 %v1135_v0 }
  0x39   :  { %971 = vmatpush3.bf16.msra.mxu1 %v1035_v4 }
  0x3a   :  { %972 = vmatprep.subr.bf16.mxu1 %v1135_v0 }
  0x3d   :  { %973 = vmatpush3.bf16.msra.mxu1 %v1036_v5 }
  0x3e   :  { %994 = vmatprep.subr.bf16.mxu1 %v1135_v0 }
 0x102   :  { %v125_v14 = vpop.f32.mrb[0].mxu0  ;;  %v213_v26 = vpop.f32.mrb[0].mxu1 }
 0x103   :  { %v126_v15 = vadd.f32 %v125_v14, %v74_v13  ;;  %v948_v16 = vpop.f32.mrb[1].mxu0  ;;  %v956_v27 = vpop.f32.mrb[1].mxu1  ;;  %v214_v41 = vadd.f32 %v213_v26, %v163_v36  ;;  %v1038_v36 = vld [vmem:[%s1445_s2 + $0x18] sm:$0xff]  }
 0x104   :  { %v128_v17 = vpop.f32.mrb[2].mxu0  ;;  %v216_v28 = vpop.f32.mrb[2].mxu1 }
 0x105   :  { %v949_v18 = vpop.f32.mrb[3].mxu0  ;;  %v131_v19 = vadd.f32 %v126_v15, %v61_v3  ;;  %v957_v29 = vpop.f32.mrb[3].mxu1 }
 0x106   :  { %v322_v18 = vsub.s32 2, %v1248_v10 }
 0x107   :  { %v132_v20 = vsel %vm87_vm1, %v131_v19, 0.0 }
 0x108   :  { %133 = vadd.xlane.f32.xlu0 %v132_v20 }
 0x195   :  { %v134_v21 = vpop.xlane.xlu0 %133 }
 0x196   :  { %v136_v22 = vmul.f32 0.03125, %v134_v21 }
 0x198   :  { %v137_v23 = vsub.f32 %v131_v19, %v136_v22  ;;  %v323_v19 = vrot.slane %v1254_v12, %v322_v18 }
 0x19a   :  { %v138_v24 = vmul.f32 %v137_v23, %v137_v23 }
 0x19c   :  { %v139_v25 = vsel %vm87_vm1, %v138_v24, 0.0 }
 0x19d   :  { %140 = vadd.xlane.f32.xlu0 %v139_v25 }
 0x22a   :  { %v141_v30 = vpop.xlane.xlu0 %140 }
 0x22b   :  { %v142_v31 = vmul.f32 0.03125, %v141_v30 }
 0x22d   :  { %v143_v32 = vadd.f32 1e-05, %v142_v31 }
 0x22f   :  { %1049 = vrsqrt.f32 %v143_v32  ;;  %v1037_v32 = vld [vmem:[%s1445_s2 + $0x10] sm:$0xff]   ;;  %s1137_s2 = smov [#allocation7]  }
 0x230   :  { %s842_s23 = sshll.u32 %s1137_s2, 4  ;;  %s843_s23 = int_to_ptr.vmem [resolvable:$true] %s842_s23 }
 0x231   :  { %s1105_s24 = scalar_lea.vmem %s843_s23, 128  ;;  %p1110_p3 = scmp.lt.s32.totalorder %s843_s23, %s843_s23 }
 0x232   :  { %p1106_p2 = scmp.ne.s32.totalorder %s843_s23, %s1105_s24  ;;  %p1111_p4 = scmp.lt.s32.totalorder %s1105_s24, %s1105_s24 }
 0x234   :  { %p1112_p5 = por %p1111_p4, %p1110_p3 }
 0x236   :  { %p1113_p6 = pnand %p1112_p5, %p1106_p2 }
 0x239   :  { %v1050_v38 = vpop.eup %1049 }
 0x23a   :  { %v145_v39 = vmul.f32 %v1050_v38, %v137_v23 }
 0x23c   :  { %v150_v42 = vmul.f32 %v149_v37, %v145_v39 }
 0x23e   :  { %v155_v43 = vadd.f32 %v154_v40, %v150_v42  ;;  %v408_v40 = vsub.s32 7, %v1248_v10 }
 0x240   :  { %v219_v44 = vadd.f32 %v214_v41, %v155_v43  ;;  %v409_v41 = vrot.slane %v1254_v12, %v408_v40  ;;  %v1040_v12 = vld [vmem:[%s1446_s3 + $0x18] sm:$0xff]  }
 0x242   :  { %v220_v45 = vsel %vm87_vm1, %v219_v44, 0.0 }
 0x243   :  { %221 = vadd.xlane.f32.xlu1 %v220_v45 }
 0x2d0   :  { %v222_v46 = vpop.xlane.xlu1 %221 }
 0x2d1   :  { %v223_v47 = vmul.f32 0.03125, %v222_v46 }
 0x2d3   :  { %v224_v48 = vsub.f32 %v219_v44, %v223_v47  ;;  %v867_v44 = vld [vmem:[%s1449_s6 + $0x8] ss:$0 sm:$0xff] }
 0x2d5   :  { %v225_v49 = vmul.f32 %v224_v48, %v224_v48 }
 0x2d7   :  { %v226_v50 = vsel %vm87_vm1, %v225_v49, 0.0  ;;  %v1355_v49 = vld [vmem:[%s1449_s6 + $0x10] sm:$0xff] }
 0x2d8   :  { %227 = vadd.xlane.f32.xlu1 %v226_v50  ;;  %v428_v50 = vrot.slane %v1355_v49, %v73_v11 }
 0x365   :  { %v228_v55 = vpop.xlane.xlu1 %227 }
 0x366   :  { %v229_v56 = vmul.f32 0.03125, %v228_v55 }
 0x368   :  { %v230_v57 = vadd.f32 1e-05, %v229_v56 }
 0x36a   :  { %1051 = vrsqrt.f32 %v230_v57 }
 0x374   :  { %v1052_v61 = vpop.eup %1051 }
 0x375   :  { %v232_v62 = vmul.f32 %v1052_v61, %v224_v48  ;;  %v1039_v48 = vld [vmem:[%s1446_s3 + $0x10] sm:$0xff]  }
 0x377   :  { %v237_v1 = vmul.f32 %v236_v60, %v232_v62 }
 0x379   :  { %v242_v2 = vadd.f32 %v241_v63, %v237_v1 }
 0x37b   :  { %v243_v3 = vpack.c.bf16 %v242_v2, %v242_v2 }
 0x37d   :  { %963 = vmatmul.mubr.msk.bf16.vlgmr.msra.gmra.mrb[4].mxu0 %vm87_vm1, %v243_v3 }
 0x37e   :  { %982 = vmatprep.mubr.msk.bf16.mxu0 %vm1136_vm0, %v1135_v0  ;;  %979 = vmatpush3.bf16.msra.mxu0 %v1037_v32 }
 0x37f   :  { %980 = vmatprep.subr.bf16.mxu0 %v1135_v0 }
 0x382   :  { %981 = vmatpush3.bf16.msra.mxu0 %v1038_v36 }
 0x383   :  { %986 = vmatprep.subr.bf16.mxu0 %v1135_v0 }
 0x450   :  { %v304_v7 = vpop.f32.mrb[4].mxu0 }
 0x451   :  { %v305_v9 = vadd.f32 %v858_v6, %v304_v7  ;;  %v964_v13 = vpop.f32.mrb[5].mxu0  ;;  %v516_v7 = vrot.slane %v1355_v49, %v162_v33 }
 0x452   :  { %v307_v14 = vpop.f32.mrb[6].mxu0 }
 0x453   :  { %v310_v15 = vmax.f32 %v305_v9, 0.0  ;;  %v965_v16 = vpop.f32.mrb[7].mxu0  ;;  %v501_v9 = vrot.slane %v1355_v49, %v148_v34  ;;  %v1041_v34 = vld [vmem:[%s1447_s4 + $0x10] sm:$0xff]  }
 0x455   :  { %v311_v17 = vpack.c.bf16 %v310_v15, %v310_v15  ;;  %v506_v15 = vrot.slane %v1355_v49, %v153_v35  ;;  %v1042_v35 = vld [vmem:[%s1447_s4 + $0x18] sm:$0xff]  }
 0x457   :  { %975 = vmatmul.mubr.msk.bf16.vlgmr.msra.gmra.mrb[4].mxu1 %vm348_vm2, %v311_v17 }
 0x458   :  { %998 = vmatprep.mubr.msk.bf16.mxu1 %vm1136_vm0, %v1135_v0  ;;  %995 = vmatpush3.bf16.msra.mxu1 %v1041_v34 }
 0x459   :  { %996 = vmatprep.subr.bf16.mxu1 %v1135_v0 }
 0x45c   :  { %997 = vmatpush3.bf16.msra.mxu1 %v1042_v35 }
 0x45d   :  { %1014 = vmatprep.subr.bf16.mxu1 %v1135_v0 }
 0x52a   :  { %v386_v20 = vpop.f32.mrb[4].mxu1 }
 0x52b   :  { %v387_v21 = vadd.f32 %v386_v20, %v323_v19  ;;  %v976_v22 = vpop.f32.mrb[5].mxu1 }
 0x52c   :  { %v389_v23 = vpop.f32.mrb[6].mxu1 }
 0x52d   :  { %v977_v24 = vpop.f32.mrb[7].mxu1  ;;  %v392_v25 = vadd.f32 %v387_v21, %v242_v2 }
 0x52f   :  { %v393_v26 = vsel %vm87_vm1, %v392_v25, 0.0 }
 0x530   :  { %394 = vadd.xlane.f32.xlu0 %v393_v26  ;;  %v1043_v26 = vld [vmem:[%s1448_s5 + $0x20] sm:$0xff]  }
 0x5bd   :  { %v395_v27 = vpop.xlane.xlu0 %394 }
 0x5be   :  { %v396_v28 = vmul.f32 0.03125, %v395_v27  ;;  %v1044_v27 = vld [vmem:[%s1448_s5 + $0x28] sm:$0xff]  }
 0x5c0   :  { %v397_v29 = vsub.f32 %v392_v25, %v396_v28 }
 0x5c2   :  { %v398_v30 = vmul.f32 %v397_v29, %v397_v29 }
 0x5c4   :  { %v399_v31 = vsel %vm87_vm1, %v398_v30, 0.0 }
 0x5c5   :  { %400 = vadd.xlane.f32.xlu1 %v399_v31  ;;  %v586_v31 = vrot.slane %v1355_v49, %v235_v58  ;;  %v1046_v58 = vld [vmem:[%s1448_s5 + $0x38] sm:$0xff]  }
 0x652   :  { %v401_v37 = vpop.xlane.xlu1 %400 }
 0x653   :  { %v402_v38 = vmul.f32 0.03125, %v401_v37  ;;  %v591_v37 = vrot.slane %v1355_v49, %v240_v59  ;;  %v889_v59 = vld [vmem:[%s1450_s7 + $0x1] ss:$0 sm:$0xff] }
 0x655   :  { %v403_v39 = vadd.f32 1e-05, %v402_v38 }
 0x657   :  { %1053 = vrsqrt.f32 %v403_v39 }
 0x661   :  { %v1054_v42 = vpop.eup %1053 }
 0x662   :  { %v405_v43 = vmul.f32 %v1054_v42, %v397_v29  ;;  %v1045_v42 = vld [vmem:[%s1448_s5 + $0x30] sm:$0xff]  }
 0x664   :  { %v410_v45 = vmul.f32 %v409_v41, %v405_v43 }
 0x666   :  { %v415_v46 = vadd.f32 %v867_v44, %v410_v45 }
 0x668   :  { %v419_v47 = vpack.c.bf16 %v415_v46, %v415_v46 }
 0x66a   :  { %983 = vmatmul.mubr.msk.bf16.vlgmr.msra.gmra.mrb[8].mxu0 %vm87_vm1, %v419_v47 }
 0x66b   :  { %990 = vmatprep.mubr.msk.bf16.mxu0 %vm1136_vm0, %v1135_v0  ;;  %987 = vmatpush3.bf16.msra.mxu0 %v1039_v48 }
 0x66c   :  { %988 = vmatprep.subr.bf16.mxu0 %v1135_v0 }
 0x66f   :  { %989 = vmatpush3.bf16.msra.mxu0 %v1040_v12 }
 0x670   :  { %1002 = vmatprep.subr.bf16.mxu0 %v1135_v0 }
 0x672   :  { %991 = vmatmul.mubr.msk.bf16.vlgmr.msra.gmra.mrb[12].mxu0 %vm87_vm1, %v1241_v8 }
 0x673   :  { %1010 = vmatprep.mubr.msk.bf16.mxu0 %vm1136_vm0, %v1135_v0  ;;  %1003 = vmatpush3.bf16.msra.mxu0 %v1043_v26 }
 0x674   :  { %1004 = vmatprep.subr.bf16.mxu0 %v1135_v0 }
 0x677   :  { %1005 = vmatpush3.bf16.msra.mxu0 %v1044_v27 }
 0x678   :  { %1006 = vmatprep.subr.bf16.mxu0 %v1135_v0 }
 0x67b   :  { %1007 = vmatpush3.bf16.msra.mxu0 %v1045_v42 }
 0x67c   :  { %1008 = vmatprep.subr.bf16.mxu0 %v1135_v0 }
 0x67f   :  { %1009 = vmatpush3.bf16.msra.mxu0 %v1046_v58 }
 0x73d   :  { %v478_v51 = vpop.f32.mrb[8].mxu0 }
 0x73e   :  { %v479_v52 = vadd.f32 %v478_v51, %v428_v50  ;;  %v984_v53 = vpop.f32.mrb[9].mxu0  ;;  %v676_v50 = vrot.slane %v1355_v49, %v322_v18  ;;  %v1047_v18 = vld [vmem:[%s1451_s8] sm:$0xff]  }
 0x73f   :  { %v481_v54 = vpop.f32.mrb[10].mxu0 }
 0x740   :  { %v985_v55 = vpop.f32.mrb[11].mxu0  ;;  %v484_v56 = vadd.f32 %v479_v52, %v415_v46 }
 0x742   :  { %v485_v8 = vsel %vm87_vm1, %v484_v56, 0.0 }
 0x743   :  { %486 = vadd.xlane.f32.xlu0 %v485_v8 }
 0x745   :  { %v563_v1 = vpop.f32.mrb[12].mxu0 }
 0x746   :  { %v992_v2 = vpop.f32.mrb[13].mxu0  ;;  %v564_v16 = vadd.f32 %v563_v1, %v516_v7  ;;  %v1048_v1 = vld [vmem:[%s1451_s8 + $0x8] sm:$0xff]   ;;  %v906_v7 = vld [vmem:[%s1449_s6 + $0x18] ss:$0 sm:$0xff] }
 0x747   :  { %v566_v3 = vpop.f32.mrb[14].mxu0 }
 0x748   :  { %v993_v11 = vpop.f32.mrb[15].mxu0 }
 0x7d0   :  { %v487_v57 = vpop.xlane.xlu0 %486 }
 0x7d1   :  { %v488_v60 = vmul.f32 0.03125, %v487_v57 }
 0x7d3   :  { %v489_v61 = vsub.f32 %v484_v56, %v488_v60 }
 0x7d5   :  { %v490_v62 = vmul.f32 %v489_v61, %v489_v61 }
 0x7d7   :  { %v491_v63 = vsel %vm87_vm1, %v490_v62, 0.0 }
 0x7d8   :  { %492 = vadd.xlane.f32.xlu1 %v491_v63 }
 0x865   :  { %v493_v4 = vpop.xlane.xlu1 %492 }
 0x866   :  { %v494_v5 = vmul.f32 0.03125, %v493_v4  ;;  %v761_v4 = vrot.slane %v1355_v49, %v408_v40 }
 0x868   :  { %v495_v6 = vadd.f32 1e-05, %v494_v5 }
 0x86a   :  { %1055 = vrsqrt.f32 %v495_v6 }
 0x874   :  { %v1056_v13 = vpop.eup %1055 }
 0x875   :  { %v497_v14 = vmul.f32 %v1056_v13, %v489_v61 }
 0x877   :  { %v502_v17 = vmul.f32 %v501_v9, %v497_v14  ;;  %v907_v14 = vld [vmem:[%s1452_s9] ss:$0 sm:$0xff] }
 0x879   :  { %v507_v19 = vadd.f32 %v506_v15, %v502_v17 }
 0x87b   :  { %v569_v20 = vadd.f32 %v564_v16, %v507_v19 }
 0x87d   :  { %v570_v21 = vsel %vm87_vm1, %v569_v20, 0.0 }
 0x87e   :  { %571 = vadd.xlane.f32.xlu0 %v570_v21 }
 0x90b   :  { %v572_v22 = vpop.xlane.xlu0 %571 }
 0x90c   :  { %v573_v23 = vmul.f32 0.03125, %v572_v22 }
 0x90e   :  { %v574_v33 = vsub.f32 %v569_v20, %v573_v23 }
 0x910   :  { %v575_v24 = vmul.f32 %v574_v33, %v574_v33 }
 0x912   :  { %v576_v25 = vsel %vm87_vm1, %v575_v24, 0.0 }
 0x913   :  { %577 = vadd.xlane.f32.xlu1 %v576_v25 }
 0x9a0   :  { %v578_v28 = vpop.xlane.xlu1 %577 }
 0x9a1   :  { %v579_v29 = vmul.f32 0.03125, %v578_v28 }
 0x9a3   :  { %v580_v30 = vadd.f32 1e-05, %v579_v29 }
 0x9a5   :  { %1057 = vrsqrt.f32 %v580_v30 }
 0x9af   :  { %v1058_v32 = vpop.eup %1057 }
 0x9b0   :  { %v582_v36 = vmul.f32 %v1058_v32, %v574_v33 }
 0x9b2   :  { %v587_v38 = vmul.f32 %v586_v31, %v582_v36 }
 0x9b4   :  { %v592_v39 = vadd.f32 %v591_v37, %v587_v38 }
 0x9b6   :  { %v593_v41 = vpack.c.bf16 %v592_v39, %v592_v39 }
 0x9b8   :  { %999 = vmatmul.mubr.msk.bf16.vlgmr.msra.gmra.mrb[8].mxu1 %vm87_vm1, %v593_v41 }
 0x9b9   :  { %1018 = vmatprep.mubr.msk.bf16.mxu1 %vm1136_vm0, %v1135_v0  ;;  %1015 = vmatpush3.bf16.msra.mxu1 %v1047_v18 }
 0x9ba   :  { %1016 = vmatprep.subr.bf16.mxu1 %v1135_v0 }
 0x9bd   :  { %1017 = vmatpush3.bf16.msra.mxu1 %v1048_v1 }
 0xa8b   :  { %v656_v43 = vpop.f32.mrb[8].mxu1 }
 0xa8c   :  { %v657_v44 = vadd.f32 %v889_v59, %v656_v43  ;;  %v1000_v45 = vpop.f32.mrb[9].mxu1 }
 0xa8d   :  { %v659_v46 = vpop.f32.mrb[10].mxu1 }
 0xa8e   :  { %v662_v47 = vmax.f32 %v657_v44, 0.0  ;;  %v1001_v48 = vpop.f32.mrb[11].mxu1 }
 0xa90   :  { %v663_v12 = vpack.c.bf16 %v662_v47, %v662_v47 }
 0xa92   :  { %1011 = vmatmul.mubr.msk.bf16.vlgmr.msra.gmra.mrb[16].mxu0 %vm348_vm2, %v663_v12 }
 0xb65   :  { %v738_v51 = vpop.f32.mrb[16].mxu0 }
 0xb66   :  { %v739_v52 = vadd.f32 %v738_v51, %v676_v50  ;;  %v1012_v53 = vpop.f32.mrb[17].mxu0 }
 0xb67   :  { %v741_v54 = vpop.f32.mrb[18].mxu0 }
 0xb68   :  { %v1013_v55 = vpop.f32.mrb[19].mxu0  ;;  %v744_v56 = vadd.f32 %v739_v52, %v592_v39 }
 0xb6a   :  { %v745_v8 = vsel %vm87_vm1, %v744_v56, 0.0 }
 0xb6b   :  { %746 = vadd.xlane.f32.xlu0 %v745_v8 }
 0xbf8   :  { %v747_v57 = vpop.xlane.xlu0 %746 }
 0xbf9   :  { %v748_v60 = vmul.f32 0.03125, %v747_v57 }
 0xbfb   :  { %v749_v61 = vsub.f32 %v744_v56, %v748_v60 }
 0xbfd   :  { %v750_v62 = vmul.f32 %v749_v61, %v749_v61 }
 0xbff   :  { %v751_v63 = vsel %vm87_vm1, %v750_v62, 0.0 }
 0xc00   :  { %752 = vadd.xlane.f32.xlu1 %v751_v63 }
 0xc8d   :  { %v753_v2 = vpop.xlane.xlu1 %752 }
 0xc8e   :  { %v754_v3 = vmul.f32 0.03125, %v753_v2 }
 0xc90   :  { %v755_v11 = vadd.f32 1e-05, %v754_v3 }
 0xc92   :  { %1059 = vrsqrt.f32 %v755_v11 }
 0xc9c   :  { %v1060_v5 = vpop.eup %1059 }
 0xc9d   :  { %v757_v6 = vmul.f32 %v1060_v5, %v749_v61 }
 0xc9f   :  { %v762_v0 = vmul.f32 %v761_v4, %v757_v6 }
 0xca1   :  { %v767_v9 = vadd.f32 %v906_v7, %v762_v0 }
 0xca3   :  { %v768_v13 = vpack.c.bf16 %v767_v9, %v767_v9 }
 0xca5   :  { %1019 = vmatmul.mubr.msk.bf16.vlgmr.msra.gmra.mrb[12].mxu1 %vm87_vm1, %v768_v13 }
 0xd78   :  { %v829_v10 = vpop.f32.mrb[12].mxu1 }
 0xd79   :  { %v830_v15 = vadd.f32 %v907_v14, %v829_v10  ;;  %v1020_v40 = vpop.f32.mrb[13].mxu1 }
 0xd7a   :  { %v832_v49 = vpop.f32.mrb[14].mxu1 }
 0xd7b   :  { %835 = vst [vmem:[#allocation7] sm:$0xff] %v830_v15  ;;  %v1021_v16 = vpop.f32.mrb[15].mxu1 }
 0xd7c   :  { %1116 = shalt.err (!%p1113_p6)
}
 0xd7d   :  { %s1117_s9 = scalar_lea.hbm %s1453_s10, 128 }
 0xd7e   :  { %p1118_p7 = scmp.ne.s32.totalorder %s1453_s10, %s1117_s9  ;;  %p1121_p8 = scmp.lt.u32.totalorder %s1117_s9, %s1453_s10 }
 0xd80   :  { %p1123_p9 = pnand %p1121_p8, %p1118_p7 }
 0xd82   :  { %1126 = shalt.err (!%p1123_p9)
}
 0xd83   :  { %845 = dma.vmem_to_hbm [thread:$0]  %s843_s23, 128, %s1453_s10, [#allocation4]  }
 0xd84   :  { %1131 = dma.done.wait [#allocation4], 128  }
 0xd85   :  { %1132 = vsyncadd [#allocation4], 4294967168 }
 0xd86   :  { %849 = vsyncpa [#allocation3], 1 }
 0xd87   :  { %850 = vsyncpa [#allocation6], 1 }
 0xd88   :  { %851 = vsyncpa [#allocation4], 1 }

// kernel: tpu_custom_call.1
= control target key start
LH: loop header
LB: loop body
LE: loop exit
PB: predicated region body
PF: predicated region fallthrough
CT: control target
= control target key end

     0   :  { %15 = vsyncpa [#allocation3], 0  ;;  %s1443_s0 = inlined_call_operand.hbm [shape: f32[8,32], index: 0, kind: input, shape index: {}]   ;;  %s1444_s1 = inlined_call_operand.hbm [shape: f32[8,32], index: 1, kind: input, shape index: {}]   ;;  %s1445_s2 = inlined_call_operand.vmem [shape: bf16[2,32,32], index: 2, kind: input, shape index: {}]   ;;  %s1446_s3 = inlined_call_operand.vmem [shape: bf16[2,32,32], index: 3, kind: input, shape index: {}]   ;;  %s1447_s4 = inlined_call_operand.vmem [shape: bf16[2,32,64], index: 4, kind: input, shape index: {}]   ;;  %s1448_s5 = inlined_call_operand.vmem [shape: bf16[2,64,32], index: 5, kind: input, shape index: {}]   ;;  %s1449_s6 = inlined_call_operand.vmem [shape: f32[2,9,32], index: 6, kind: input, shape index: {}]   ;;  %s1450_s7 = inlined_call_operand.vmem [shape: f32[2,1,64], index: 7, kind: input, shape index: {}]   ;;  %s1451_s8 = inlined_call_operand.vmem [shape: bf16[32,128], index: 8, kind: input, shape index: {}]   ;;  %s1452_s9 = inlined_call_operand.vmem [shape: f32[1,128], index: 9, kind: input, shape index: {}]   ;;  %s1453_s10 = inlined_call_operand.hbm [shape: f32[8,128], index: 10, kind: output, shape index: {}]  }
   0x1   :  { %16 = vsyncpa [#allocation6], 0 }
   0x2   :  { %17 = vsyncpa [#allocation4], 0  ;;  %s1133_s13 = smov [#allocation2]   ;;  %s1134_s15 = smov [#allocation5]  }
   0x3   :  { %s24_s14 = sshll.u32 %s1133_s13, 4  ;;  %s34_s16 = sshll.u32 %s1134_s15, 4  ;;  %s25_s14 = int_to_ptr.vmem [resolvable:$true] %s24_s14  ;;  %s35_s16 = int_to_ptr.vmem [resolvable:$true] %s34_s16 }
   0x4   :  { %s1061_s19 = scalar_lea.hbm %s1443_s0, 128 }
   0x5   :  { %p1062_p0 = scmp.ne.s32.totalorder %s1443_s0, %s1061_s19  ;;  %p1065_p1 = scmp.lt.u32.totalorder %s1061_s19, %s1443_s0 }
   0x7   :  { %p1067_p2 = pnand %p1065_p1, %p1062_p0 }
   0x9   :  { %1070 = shalt.err (!%p1067_p2)
}
   0xa   :  { %s1071_s24 = scalar_lea.vmem %s25_s14, 128  ;;  %p1076_p4 = scmp.lt.s32.totalorder %s25_s14, %s25_s14 }
   0xb   :  { %p1072_p3 = scmp.ne.s32.totalorder %s25_s14, %s1071_s24  ;;  %p1077_p5 = scmp.lt.s32.totalorder %s1071_s24, %s1071_s24 }
   0xd   :  { %p1078_p6 = por %p1077_p5, %p1076_p4 }
   0xf   :  { %p1079_p7 = pnand %p1078_p6, %p1072_p3 }
  0x11   :  { %1082 = shalt.err (!%p1079_p7)
}
  0x12   :  { %27 = dma.hbm_to_vmem [thread:$0]  %s1443_s0, 128, %s25_s14, [#allocation3]  }
  0x13   :  { %s1083_s29 = scalar_lea.hbm %s1444_s1, 128 }
  0x14   :  { %p1084_p8 = scmp.ne.s32.totalorder %s1444_s1, %s1083_s29  ;;  %p1087_p9 = scmp.lt.u32.totalorder %s1083_s29, %s1444_s1 }
  0x16   :  { %p1089_p10 = pnand %p1087_p9, %p1084_p8 }
  0x18   :  { %1092 = shalt.err (!%p1089_p10)
}
  0x19   :  { %s1093_s15 = scalar_lea.vmem %s35_s16, 128  ;;  %p1098_p12 = scmp.lt.s32.totalorder %s35_s16, %s35_s16 }
  0x1a   :  { %p1094_p11 = scmp.ne.s32.totalorder %s35_s16, %s1093_s15  ;;  %p1099_p13 = scmp.lt.s32.totalorder %s1093_s15, %s1093_s15 }
  0x1c   :  { %p1100_p0 = por %p1099_p13, %p1098_p12 }
  0x1e   :  { %p1101_p1 = pnand %p1100_p0, %p1094_p11 }
  0x20   :  { %1104 = shalt.err (!%p1101_p1)
}
  0x21   :  { %37 = dma.hbm_to_vmem [thread:$0]  %s1444_s1, 128, %s35_s16, [#allocation6]  }
  0x22   :  { %1127 = dma.done.wait [#allocation3], 128  }
  0x23   :  { %1128 = vsyncadd [#allocation3], 4294967168 }
  0x24   :  { %1129 = dma.done.wait [#allocation6], 128  }
  0x25   :  { %1130 = vsyncadd [#allocation6], 4294967168  ;;  %v1135_v0 = vmov 0.0   ;;  %vm1136_vm0 = vmmov 0   ;;  %v1027_v1 = vld [vmem:[%s1445_s2] sm:$0xff]   ;;  %v1028_v2 = vld [vmem:[%s1445_s2 + $0x8] sm:$0xff]   ;;  %v71_v9 = vlaneseq }
  0x26   :  { %942 = vmatprep.subr.bf16.mxu0 %v1135_v0  ;;  %946 = vmatprep.mubr.msk.bf16.mxu0 %vm1136_vm0, %v1135_v0  ;;  %v61_v3 = vld [vmem:[#allocation2] sm:$0xff]  ;;  %vm87_vm1 = vcmask 261120   ;;  %v1030_v6 = vld [vmem:[%s1446_s3 + $0x8] sm:$0xff]   ;;  %vm348_vm2 = vcmask 523264  }
  0x27   :  { %950 = vmatprep.subr.bf16.mxu1 %v1135_v0  ;;  %954 = vmatprep.mubr.msk.bf16.mxu1 %vm1136_vm0, %v1135_v0  ;;  %v66_v4 = vpack.c.bf16 %v61_v3, %v61_v3  ;;  %v1029_v5 = vld [vmem:[%s1446_s3] sm:$0xff]   ;;  %v62_v7 = vld [vmem:[#allocation5] sm:$0xff]  ;;  %v1248_v10 = vshrl.u32 %v71_v9, 7 }
  0x28   :  { %943 = vmatpush3.bf16.msra.mxu0 %v1027_v1  ;;  %951 = vmatpush3.bf16.msra.mxu1 %v1029_v5  ;;  %v1241_v8 = vpack.c.bf16 %v62_v7, %v62_v7  ;;  %v1254_v12 = vld [vmem:[%s1449_s6] sm:$0xff]  ;;  %v1032_v52 = vld [vmem:[%s1447_s4 + $0x8] sm:$0xff]   ;;  %v1036_v5 = vld [vmem:[%s1448_s5 + $0x18] sm:$0xff]  }
  0x29   :  { %944 = vmatprep.subr.bf16.mxu0 %v1135_v0  ;;  %952 = vmatprep.subr.bf16.mxu1 %v1135_v0  ;;  %v73_v11 = vsub.s32 0, %v1248_v10  ;;  %v162_v33 = vsub.s32 1, %v1248_v10  ;;  %v148_v34 = vsub.s32 3, %v1248_v10  ;;  %v153_v35 = vsub.s32 4, %v1248_v10  ;;  %v1031_v51 = vld [vmem:[%s1447_s4] sm:$0xff]   ;;  %v1034_v54 = vld [vmem:[%s1448_s5 + $0x8] sm:$0xff]  }
  0x2a   :  { %v1033_v53 = vld [vmem:[%s1448_s5] sm:$0xff]   ;;  %v235_v58 = vsub.s32 5, %v1248_v10  ;;  %v240_v59 = vsub.s32 6, %v1248_v10 }
  0x2b   :  { %v74_v13 = vrot.slane %v1254_v12, %v73_v11  ;;  %v163_v36 = vrot.slane %v1254_v12, %v162_v33  ;;  %v149_v37 = vrot.slane %v1254_v12, %v148_v34  ;;  %v154_v40 = vrot.slane %v1254_v12, %v153_v35 }
  0x2c   :  { %945 = vmatpush3.bf16.msra.mxu0 %v1028_v2  ;;  %953 = vmatpush3.bf16.msra.mxu1 %v1030_v6  ;;  %v236_v60 = vrot.slane %v1254_v12, %v235_v58  ;;  %v241_v63 = vrot.slane %v1254_v12, %v240_v59  ;;  %v858_v6 = vld [vmem:[%s1450_s7] ss:$0 sm:$0xff] }
  0x2d   :  { %958 = vmatprep.subr.bf16.mxu0 %v1135_v0  ;;  %966 = vmatprep.subr.bf16.mxu1 %v1135_v0 }
  0x2f   :  { %947 = vmatmul.mubr.msk.bf16.vlgmr.msra.gmra.mrb[0].mxu0 %vm87_vm1, %v66_v4  ;;  %955 = vmatmul.mubr.msk.bf16.vlgmr.msra.gmra.mrb[0].mxu1 %vm87_vm1, %v1241_v8  ;;  %v1035_v4 = vld [vmem:[%s1448_s5 + $0x10] sm:$0xff]  }
  0x30   :  { %962 = vmatprep.mubr.msk.bf16.mxu0 %vm1136_vm0, %v1135_v0  ;;  %974 = vmatprep.mubr.msk.bf16.mxu1 %vm1136_vm0, %v1135_v0 }
  0x31   :  { %959 = vmatpush3.bf16.msra.mxu0 %v1031_v51  ;;  %967 = vmatpush3.bf16.msra.mxu1 %v1033_v53 }
  0x32   :  { %960 = vmatprep.subr.bf16.mxu0 %v1135_v0  ;;  %968 = vmatprep.subr.bf16.mxu1 %v1135_v0 }
  0x35   :  { %961 = vmatpush3.bf16.msra.mxu0 %v1032_v52  ;;  %969 = vmatpush3.bf16.msra.mxu1 %v1034_v54 }
  0x36   :  { %978 = vmatprep.subr.bf16.mxu0 %v1135_v0  ;;  %970 = vmatprep.subr.bf16.mxu1 %v1135_v0 }
  0x39   :  { %971 = vmatpush3.bf16.msra.mxu1 %v1035_v4 }
  0x3a   :  { %972 = vmatprep.subr.bf16.mxu1 %v1135_v0 }
  0x3d   :  { %973 = vmatpush3.bf16.msra.mxu1 %v1036_v5 }
  0x3e   :  { %994 = vmatprep.subr.bf16.mxu1 %v1135_v0 }
 0x102   :  { %v125_v14 = vpop.f32.mrb[0].mxu0  ;;  %v213_v26 = vpop.f32.mrb[0].mxu1 }
 0x103   :  { %v126_v15 = vadd.f32 %v125_v14, %v74_v13  ;;  %v948_v16 = vpop.f32.mrb[1].mxu0  ;;  %v956_v27 = vpop.f32.mrb[1].mxu1  ;;  %v214_v41 = vadd.f32 %v213_v26, %v163_v36  ;;  %v1038_v36 = vld [vmem:[%s1445_s2 + $0x18] sm:$0xff]  }
 0x104   :  { %v128_v17 = vpop.f32.mrb[2].mxu0  ;;  %v216_v28 = vpop.f32.mrb[2].mxu1 }
 0x105   :  { %v949_v18 = vpop.f32.mrb[3].mxu0  ;;  %v131_v19 = vadd.f32 %v126_v15, %v61_v3  ;;  %v957_v29 = vpop.f32.mrb[3].mxu1 }
 0x106   :  { %v322_v18 = vsub.s32 2, %v1248_v10 }
 0x107   :  { %v132_v20 = vsel %vm87_vm1, %v131_v19, 0.0 }
 0x108   :  { %133 = vadd.xlane.f32.xlu0 %v132_v20 }
 0x195   :  { %v134_v21 = vpop.xlane.xlu0 %133 }
 0x196   :  { %v136_v22 = vmul.f32 0.03125, %v134_v21 }
 0x198   :  { %v137_v23 = vsub.f32 %v131_v19, %v136_v22  ;;  %v323_v19 = vrot.slane %v1254_v12, %v322_v18 }
 0x19a   :  { %v138_v24 = vmul.f32 %v137_v23, %v137_v23 }
 0x19c   :  { %v139_v25 = vsel %vm87_vm1, %v138_v24, 0.0 }
 0x19d   :  { %140 = vadd.xlane.f32.xlu0 %v139_v25 }
 0x22a   :  { %v141_v30 = vpop.xlane.xlu0 %140 }
 0x22b   :  { %v142_v31 = vmul.f32 0.03125, %v141_v30 }
 0x22d   :  { %v143_v32 = vadd.f32 1e-05, %v142_v31 }
 0x22f   :  { %1049 = vrsqrt.f32 %v143_v32  ;;  %v1037_v32 = vld [vmem:[%s1445_s2 + $0x10] sm:$0xff]   ;;  %s1137_s2 = smov [#allocation7]  }
 0x230   :  { %s842_s23 = sshll.u32 %s1137_s2, 4  ;;  %s843_s23 = int_to_ptr.vmem [resolvable:$true] %s842_s23 }
 0x231   :  { %s1105_s24 = scalar_lea.vmem %s843_s23, 128  ;;  %p1110_p3 = scmp.lt.s32.totalorder %s843_s23, %s843_s23 }
 0x232   :  { %p1106_p2 = scmp.ne.s32.totalorder %s843_s23, %s1105_s24  ;;  %p1111_p4 = scmp.lt.s32.totalorder %s1105_s24, %s1105_s24 }
 0x234   :  { %p1112_p5 = por %p1111_p4, %p1110_p3 }
 0x236   :  { %p1113_p6 = pnand %p1112_p5, %p1106_p2 }
 0x239   :  { %v1050_v38 = vpop.eup %1049 }
 0x23a   :  { %v145_v39 = vmul.f32 %v1050_v38, %v137_v23 }
 0x23c   :  { %v150_v42 = vmul.f32 %v149_v37, %v145_v39 }
 0x23e   :  { %v155_v43 = vadd.f32 %v154_v40, %v150_v42  ;;  %v408_v40 = vsub.s32 7, %v1248_v10 }
 0x240   :  { %v219_v44 = vadd.f32 %v214_v41, %v155_v43  ;;  %v409_v41 = vrot.slane %v1254_v12, %v408_v40  ;;  %v1040_v12 = vld [vmem:[%s1446_s3 + $0x18] sm:$0xff]  }
 0x242   :  { %v220_v45 = vsel %vm87_vm1, %v219_v44, 0.0 }
 0x243   :  { %221 = vadd.xlane.f32.xlu1 %v220_v45 }
 0x2d0   :  { %v222_v46 = vpop.xlane.xlu1 %221 }
 0x2d1   :  { %v223_v47 = vmul.f32 0.03125, %v222_v46 }
 0x2d3   :  { %v224_v48 = vsub.f32 %v219_v44, %v223_v47  ;;  %v867_v44 = vld [vmem:[%s1449_s6 + $0x8] ss:$0 sm:$0xff] }
 0x2d5   :  { %v225_v49 = vmul.f32 %v224_v48, %v224_v48 }
 0x2d7   :  { %v226_v50 = vsel %vm87_vm1, %v225_v49, 0.0  ;;  %v1355_v49 = vld [vmem:[%s1449_s6 + $0x10] sm:$0xff] }
 0x2d8   :  { %227 = vadd.xlane.f32.xlu1 %v226_v50  ;;  %v428_v50 = vrot.slane %v1355_v49, %v73_v11 }
 0x365   :  { %v228_v55 = vpop.xlane.xlu1 %227 }
 0x366   :  { %v229_v56 = vmul.f32 0.03125, %v228_v55 }
 0x368   :  { %v230_v57 = vadd.f32 1e-05, %v229_v56 }
 0x36a   :  { %1051 = vrsqrt.f32 %v230_v57 }
 0x374   :  { %v1052_v61 = vpop.eup %1051 }
 0x375   :  { %v232_v62 = vmul.f32 %v1052_v61, %v224_v48  ;;  %v1039_v48 = vld [vmem:[%s1446_s3 + $0x10] sm:$0xff]  }
 0x377   :  { %v237_v1 = vmul.f32 %v236_v60, %v232_v62 }
 0x379   :  { %v242_v2 = vadd.f32 %v241_v63, %v237_v1 }
 0x37b   :  { %v243_v3 = vpack.c.bf16 %v242_v2, %v242_v2 }
 0x37d   :  { %963 = vmatmul.mubr.msk.bf16.vlgmr.msra.gmra.mrb[4].mxu0 %vm87_vm1, %v243_v3 }
 0x37e   :  { %982 = vmatprep.mubr.msk.bf16.mxu0 %vm1136_vm0, %v1135_v0  ;;  %979 = vmatpush3.bf16.msra.mxu0 %v1037_v32 }
 0x37f   :  { %980 = vmatprep.subr.bf16.mxu0 %v1135_v0 }
 0x382   :  { %981 = vmatpush3.bf16.msra.mxu0 %v1038_v36 }
 0x383   :  { %986 = vmatprep.subr.bf16.mxu0 %v1135_v0 }
 0x450   :  { %v304_v7 = vpop.f32.mrb[4].mxu0 }
 0x451   :  { %v305_v9 = vadd.f32 %v858_v6, %v304_v7  ;;  %v964_v13 = vpop.f32.mrb[5].mxu0  ;;  %v516_v7 = vrot.slane %v1355_v49, %v162_v33 }
 0x452   :  { %v307_v14 = vpop.f32.mrb[6].mxu0 }
 0x453   :  { %v310_v15 = vmax.f32 %v305_v9, 0.0  ;;  %v965_v16 = vpop.f32.mrb[7].mxu0  ;;  %v501_v9 = vrot.slane %v1355_v49, %v148_v34  ;;  %v1041_v34 = vld [vmem:[%s1447_s4 + $0x10] sm:$0xff]  }
 0x455   :  { %v311_v17 = vpack.c.bf16 %v310_v15, %v310_v15  ;;  %v506_v15 = vrot.slane %v1355_v49, %v153_v35  ;;  %v1042_v35 = vld [vmem:[%s1447_s4 + $0x18] sm:$0xff]  }
 0x457   :  { %975 = vmatmul.mubr.msk.bf16.vlgmr.msra.gmra.mrb[4].mxu1 %vm348_vm2, %v311_v17 }
 0x458   :  { %998 = vmatprep.mubr.msk.bf16.mxu1 %vm1136_vm0, %v1135_v0  ;;  %995 = vmatpush3.bf16.msra.mxu1 %v1041_v34 }
 0x459   :  { %996 = vmatprep.subr.bf16.mxu1 %v1135_v0 }
 0x45c   :  { %997 = vmatpush3.bf16.msra.mxu1 %v1042_v35 }
 0x45d   :  { %1014 = vmatprep.subr.bf16.mxu1 %v1135_v0 }
 0x52a   :  { %v386_v20 = vpop.f32.mrb[4].mxu1 }
 0x52b   :  { %v387_v21 = vadd.f32 %v386_v20, %v323_v19  ;;  %v976_v22 = vpop.f32.mrb[5].mxu1 }
 0x52c   :  { %v389_v23 = vpop.f32.mrb[6].mxu1 }
 0x52d   :  { %v977_v24 = vpop.f32.mrb[7].mxu1  ;;  %v392_v25 = vadd.f32 %v387_v21, %v242_v2 }
 0x52f   :  { %v393_v26 = vsel %vm87_vm1, %v392_v25, 0.0 }
 0x530   :  { %394 = vadd.xlane.f32.xlu0 %v393_v26  ;;  %v1043_v26 = vld [vmem:[%s1448_s5 + $0x20] sm:$0xff]  }
 0x5bd   :  { %v395_v27 = vpop.xlane.xlu0 %394 }
 0x5be   :  { %v396_v28 = vmul.f32 0.03125, %v395_v27  ;;  %v1044_v27 = vld [vmem:[%s1448_s5 + $0x28] sm:$0xff]  }
 0x5c0   :  { %v397_v29 = vsub.f32 %v392_v25, %v396_v28 }
 0x5c2   :  { %v398_v30 = vmul.f32 %v397_v29, %v397_v29 }
 0x5c4   :  { %v399_v31 = vsel %vm87_vm1, %v398_v30, 0.0 }
 0x5c5   :  { %400 = vadd.xlane.f32.xlu1 %v399_v31  ;;  %v586_v31 = vrot.slane %v1355_v49, %v235_v58  ;;  %v1046_v58 = vld [vmem:[%s1448_s5 + $0x38] sm:$0xff]  }
 0x652   :  { %v401_v37 = vpop.xlane.xlu1 %400 }
 0x653   :  { %v402_v38 = vmul.f32 0.03125, %v401_v37  ;;  %v591_v37 = vrot.slane %v1355_v49, %v240_v59  ;;  %v889_v59 = vld [vmem:[%s1450_s7 + $0x1] ss:$0 sm:$0xff] }
 0x655   :  { %v403_v39 = vadd.f32 1e-05, %v402_v38 }
 0x657   :  { %1053 = vrsqrt.f32 %v403_v39 }
 0x661   :  { %v1054_v42 = vpop.eup %1053 }
 0x662   :  { %v405_v43 = vmul.f32 %v1054_v42, %v397_v29  ;;  %v1045_v42 = vld [vmem:[%s1448_s5 + $0x30] sm:$0xff]  }
 0x664   :  { %v410_v45 = vmul.f32 %v409_v41, %v405_v43 }
 0x666   :  { %v415_v46 = vadd.f32 %v867_v44, %v410_v45 }
 0x668   :  { %v419_v47 = vpack.c.bf16 %v415_v46, %v415_v46 }
 0x66a   :  { %983 = vmatmul.mubr.msk.bf16.vlgmr.msra.gmra.mrb[8].mxu0 %vm87_vm1, %v419_v47 }
 0x66b   :  { %990 = vmatprep.mubr.msk.bf16.mxu0 %vm1136_vm0, %v1135_v0  ;;  %987 = vmatpush3.bf16.msra.mxu0 %v1039_v48 }
 0x66c   :  { %988 = vmatprep.subr.bf16.mxu0 %v1135_v0 }
 0x66f   :  { %989 = vmatpush3.bf16.msra.mxu0 %v1040_v12 }
 0x670   :  { %1002 = vmatprep.subr.bf16.mxu0 %v1135_v0 }
 0x672   :  { %991 = vmatmul.mubr.msk.bf16.vlgmr.msra.gmra.mrb[12].mxu0 %vm87_vm1, %v1241_v8 }
 0x673   :  { %1010 = vmatprep.mubr.msk.bf16.mxu0 %vm1136_vm0, %v1135_v0  ;;  %1003 = vmatpush3.bf16.msra.mxu0 %v1043_v26 }
 0x674   :  { %1004 = vmatprep.subr.bf16.mxu0 %v1135_v0 }
 0x677   :  { %1005 = vmatpush3.bf16.msra.mxu0 %v1044_v27 }
 0x678   :  { %1006 = vmatprep.subr.bf16.mxu0 %v1135_v0 }
 0x67b   :  { %1007 = vmatpush3.bf16.msra.mxu0 %v1045_v42 }
 0x67c   :  { %1008 = vmatprep.subr.bf16.mxu0 %v1135_v0 }
 0x67f   :  { %1009 = vmatpush3.bf16.msra.mxu0 %v1046_v58 }
 0x73d   :  { %v478_v51 = vpop.f32.mrb[8].mxu0 }
 0x73e   :  { %v479_v52 = vadd.f32 %v478_v51, %v428_v50  ;;  %v984_v53 = vpop.f32.mrb[9].mxu0  ;;  %v676_v50 = vrot.slane %v1355_v49, %v322_v18  ;;  %v1047_v18 = vld [vmem:[%s1451_s8] sm:$0xff]  }
 0x73f   :  { %v481_v54 = vpop.f32.mrb[10].mxu0 }
 0x740   :  { %v985_v55 = vpop.f32.mrb[11].mxu0  ;;  %v484_v56 = vadd.f32 %v479_v52, %v415_v46 }
 0x742   :  { %v485_v8 = vsel %vm87_vm1, %v484_v56, 0.0 }
 0x743   :  { %486 = vadd.xlane.f32.xlu0 %v485_v8 }
 0x745   :  { %v563_v1 = vpop.f32.mrb[12].mxu0 }
 0x746   :  { %v992_v2 = vpop.f32.mrb[13].mxu0  ;;  %v564_v16 = vadd.f32 %v563_v1, %v516_v7  ;;  %v1048_v1 = vld [vmem:[%s1451_s8 + $0x8] sm:$0xff]   ;;  %v906_v7 = vld [vmem:[%s1449_s6 + $0x18] ss:$0 sm:$0xff] }
 0x747   :  { %v566_v3 = vpop.f32.mrb[14].mxu0 }
 0x748   :  { %v993_v11 = vpop.f32.mrb[15].mxu0 }
 0x7d0   :  { %v487_v57 = vpop.xlane.xlu0 %486 }
 0x7d1   :  { %v488_v60 = vmul.f32 0.03125, %v487_v57 }
 0x7d3   :  { %v489_v61 = vsub.f32 %v484_v56, %v488_v60 }
 0x7d5   :  { %v490_v62 = vmul.f32 %v489_v61, %v489_v61 }
 0x7d7   :  { %v491_v63 = vsel %vm87_vm1, %v490_v62, 0.0 }
 0x7d8   :  { %492 = vadd.xlane.f32.xlu1 %v491_v63 }
 0x865   :  { %v493_v4 = vpop.xlane.xlu1 %492 }
 0x866   :  { %v494_v5 = vmul.f32 0.03125, %v493_v4  ;;  %v761_v4 = vrot.slane %v1355_v49, %v408_v40 }
 0x868   :  { %v495_v6 = vadd.f32 1e-05, %v494_v5 }
 0x86a   :  { %1055 = vrsqrt.f32 %v495_v6 }
 0x874   :  { %v1056_v13 = vpop.eup %1055 }
 0x875   :  { %v497_v14 = vmul.f32 %v1056_v13, %v489_v61 }
 0x877   :  { %v502_v17 = vmul.f32 %v501_v9, %v497_v14  ;;  %v907_v14 = vld [vmem:[%s1452_s9] ss:$0 sm:$0xff] }
 0x879   :  { %v507_v19 = vadd.f32 %v506_v15, %v502_v17 }
 0x87b   :  { %v569_v20 = vadd.f32 %v564_v16, %v507_v19 }
 0x87d   :  { %v570_v21 = vsel %vm87_vm1, %v569_v20, 0.0 }
 0x87e   :  { %571 = vadd.xlane.f32.xlu0 %v570_v21 }
 0x90b   :  { %v572_v22 = vpop.xlane.xlu0 %571 }
 0x90c   :  { %v573_v23 = vmul.f32 0.03125, %v572_v22 }
 0x90e   :  { %v574_v33 = vsub.f32 %v569_v20, %v573_v23 }
 0x910   :  { %v575_v24 = vmul.f32 %v574_v33, %v574_v33 }
 0x912   :  { %v576_v25 = vsel %vm87_vm1, %v575_v24, 0.0 }
 0x913   :  { %577 = vadd.xlane.f32.xlu1 %v576_v25 }
 0x9a0   :  { %v578_v28 = vpop.xlane.xlu1 %577 }
 0x9a1   :  { %v579_v29 = vmul.f32 0.03125, %v578_v28 }
 0x9a3   :  { %v580_v30 = vadd.f32 1e-05, %v579_v29 }
 0x9a5   :  { %1057 = vrsqrt.f32 %v580_v30 }
 0x9af   :  { %v1058_v32 = vpop.eup %1057 }
 0x9b0   :  { %v582_v36 = vmul.f32 %v1058_v32, %v574_v33 }
 0x9b2   :  { %v587_v38 = vmul.f32 %v586_v31, %v582_v36 }
 0x9b4   :  { %v592_v39 = vadd.f32 %v591_v37, %v587_v38 }
 0x9b6   :  { %v593_v41 = vpack.c.bf16 %v592_v39, %v592_v39 }
 0x9b8   :  { %999 = vmatmul.mubr.msk.bf16.vlgmr.msra.gmra.mrb[8].mxu1 %vm87_vm1, %v593_v41 }
 0x9b9   :  { %1018 = vmatprep.mubr.msk.bf16.mxu1 %vm1136_vm0, %v1135_v0  ;;  %1015 = vmatpush3.bf16.msra.mxu1 %v1047_v18 }
 0x9ba   :  { %1016 = vmatprep.subr.bf16.mxu1 %v1135_v0 }
 0x9bd   :  { %1017 = vmatpush3.bf16.msra.mxu1 %v1048_v1 }
 0xa8b   :  { %v656_v43 = vpop.f32.mrb[8].mxu1 }
 0xa8c   :  { %v657_v44 = vadd.f32 %v889_v59, %v656_v43  ;;  %v1000_v45 = vpop.f32.mrb[9].mxu1 }
 0xa8d   :  { %v659_v46 = vpop.f32.mrb[10].mxu1 }
 0xa8e   :  { %v662_v47 = vmax.f32 %v657_v44, 0.0  ;;  %v1001_v48 = vpop.f32.mrb[11].mxu1 }
 0xa90   :  { %v663_v12 = vpack.c.bf16 %v662_v47, %v662_v47 }
 0xa92   :  { %1011 = vmatmul.mubr.msk.bf16.vlgmr.msra.gmra.mrb[16].mxu0 %vm348_vm2, %v663_v12 }
 0xb65   :  { %v738_v51 = vpop.f32.mrb[16].mxu0 }
 0xb66   :  { %v739_v52 = vadd.f32 %v738_v51, %v676_v50  ;;  %v1012_v53 = vpop.f32.mrb[17].mxu0 }
 0xb67   :  { %v741_v54 = vpop.f32.mrb[18].mxu0 }
 0xb68   :  { %v1013_v55 = vpop.f32.mrb[19].mxu0  ;;  %v744_v56 = vadd.f32 %v739_v52, %v592_v39 }
 0xb6a   :  { %v745_v8 = vsel %vm87_vm1, %v744_v56, 0.0 }
 0xb6b   :  { %746 = vadd.xlane.f32.xlu0 %v745_v8 }
 0xbf8   :  { %v747_v57 = vpop.xlane.xlu0 %746 }
 0xbf9   :  { %v748_v60 = vmul.f32 0.03125, %v747_v57 }
 0xbfb   :  { %v749_v61 = vsub.f32 %v744_v56, %v748_v60 }
 0xbfd   :  { %v750_v62 = vmul.f32 %v749_v61, %v749_v61 }
 0xbff   :  { %v751_v63 = vsel %vm87_vm1, %v750_v62, 0.0 }
 0xc00   :  { %752 = vadd.xlane.f32.xlu1 %v751_v63 }
 0xc8d   :  { %v753_v2 = vpop.xlane.xlu1 %752 }
 0xc8e   :  { %v754_v3 = vmul.f32 0.03125, %v753_v2 }
 0xc90   :  { %v755_v11 = vadd.f32 1e-05, %v754_v3 }
 0xc92   :  { %1059 = vrsqrt.f32 %v755_v11 }
 0xc9c   :  { %v1060_v5 = vpop.eup %1059 }
 0xc9d   :  { %v757_v6 = vmul.f32 %v1060_v5, %v749_v61 }
 0xc9f   :  { %v762_v0 = vmul.f32 %v761_v4, %v757_v6 }
 0xca1   :  { %v767_v9 = vadd.f32 %v906_v7, %v762_v0 }
 0xca3   :  { %v768_v13 = vpack.c.bf16 %v767_v9, %v767_v9 }
 0xca5   :  { %1019 = vmatmul.mubr.msk.bf16.vlgmr.msra.gmra.mrb[12].mxu1 %vm87_vm1, %v768_v13 }
 0xd78   :  { %v829_v10 = vpop.f32.mrb[12].mxu1 }
 0xd79   :  { %v830_v15 = vadd.f32 %v907_v14, %v829_v10  ;;  %v1020_v40 = vpop.f32.mrb[13].mxu1 }
 0xd7a   :  { %v832_v49 = vpop.f32.mrb[14].mxu1 }
 0xd7b   :  { %835 = vst [vmem:[#allocation7] sm:$0xff] %v830_v15  ;;  %v1021_v16 = vpop.f32.mrb[15].mxu1 }
 0xd7c   :  { %1116 = shalt.err (!%p1113_p6)
}
 0xd7d   :  { %s1117_s9 = scalar_lea.hbm %s1453_s10, 128 }
 0xd7e   :  { %p1118_p7 = scmp.ne.s32.totalorder %s1453_s10, %s1117_s9  ;;  %p1121_p8 = scmp.lt.u32.totalorder %s1117_s9, %s1453_s10 }
 0xd80   :  { %p1123_p9 = pnand %p1121_p8, %p1118_p7 }
 0xd82   :  { %1126 = shalt.err (!%p1123_p9)
}
 0xd83   :  { %845 = dma.vmem_to_hbm [thread:$0]  %s843_s23, 128, %s1453_s10, [#allocation4]  }
 0xd84   :  { %1131 = dma.done.wait [#allocation4], 128  }
 0xd85   :  { %1132 = vsyncadd [#allocation4], 4294967168 }
 0xd86   :  { %849 = vsyncpa [#allocation3], 1 }
 0xd87   :  { %850 = vsyncpa [#allocation6], 1 }
 0xd88   :  { %851 = vsyncpa [#allocation4], 1 }

</bundles_post_ra>
